<compile_context>
chip_gen: v5e
topology: v5e:2x2
jax: 0.10.0
libtpu: 0.0.40
codegen_flags: <defaults>
</compile_context>

<pallas_src>
import functools

import jax
import jax.numpy as jnp
from jax.experimental import pallas as pl
from jax.experimental.pallas import tpu as pltpu

F32 = jnp.float32
BF16 = jnp.bfloat16


# -----------------------------------------------------------------------------
# Shared helper: 3x3 conv of the (already padded) pad_ref via im2col + 1 matmul.
# pad_ref: VMEM (H+2, W+2, Cin) f32 (halo zero, interior = current input)
# w:       (9*Cin, Cout) bf16, b: (1, Cout) f32.  Returns (HW, Cout) f32.
# -----------------------------------------------------------------------------
def _im2col_conv3(pad_ref, w, b, H, W, Cin):
    HW = H * W
    taps = [pad_ref[dy:dy + H, dx:dx + W, :].reshape(HW, Cin)
            for dy in range(3) for dx in range(3)]
    col = jnp.concatenate(taps, axis=-1).astype(w.dtype)        # (HW, 9*Cin) bf16
    return jnp.dot(col, w, preferred_element_type=jnp.float32) + b


# -----------------------------------------------------------------------------
# Generic 3x3 conv kernel (head / body-tail), optional fused skip add + ReLU.
# -----------------------------------------------------------------------------
def make_conv3_kernel(H, W, Cin, Cout, relu, with_skip):
    HW = H * W

    def kernel(*refs):
        if with_skip:
            x_ref, skip_ref, w_ref, b_ref, o_ref, pad_ref = refs
        else:
            x_ref, w_ref, b_ref, o_ref, pad_ref = refs
        # Zero halo once per grid step; interior overwritten below.
        pad_ref[...] = jnp.zeros(pad_ref.shape, pad_ref.dtype)
        pad_ref[1:H + 1, 1:W + 1, :] = x_ref[0].astype(jnp.float32)
        acc = _im2col_conv3(pad_ref, w_ref[...], b_ref[...], H, W, Cin)
        if with_skip:
            acc = acc + skip_ref[0].astype(jnp.float32).reshape(HW, Cout)
        if relu:
            acc = jnp.maximum(acc, 0.0)
        o_ref[0] = acc.reshape(H, W, Cout).astype(o_ref.dtype)

    return kernel


@functools.lru_cache(maxsize=None)
def get_conv3_call(B, H, W, Cin, Cout, relu, with_skip, out_dtype):
    kernel = make_conv3_kernel(H, W, Cin, Cout, relu, with_skip)

    def const(shape):
        n = len(shape)
        return pl.BlockSpec(shape, lambda b, _n=n: (0,) * _n)

    in_specs = [pl.BlockSpec((1, H, W, Cin), lambda b: (b, 0, 0, 0))]
    if with_skip:
        in_specs.append(pl.BlockSpec((1, H, W, Cout), lambda b: (b, 0, 0, 0)))
    in_specs += [const((9 * Cin, Cout)), const((1, Cout))]

    fn = pl.pallas_call(
        kernel,
        out_shape=jax.ShapeDtypeStruct((B, H, W, Cout), out_dtype),
        grid=(B,),
        in_specs=in_specs,
        out_specs=pl.BlockSpec((1, H, W, Cout), lambda b: (b, 0, 0, 0)),
        scratch_shapes=[pltpu.VMEM((H + 2, W + 2, Cin), F32)],
        compiler_params=pltpu.CompilerParams(
            dimension_semantics=("parallel",)),
    )
    return jax.jit(fn)


# -----------------------------------------------------------------------------
# Fused ResidualGroup kernel: 16x RCAB + group-tail conv3x3 + group skip add.
# grid = (B, n_resblocks); activation carried in VMEM scratch across r.
# -----------------------------------------------------------------------------
def make_group_kernel(H, W, C, Cr, R):
    HW = H * W

    def kernel(x_ref,
               w1_ref, b1_ref, w2_ref, b2_ref,
               cw1_ref, cb1_ref, cw2_ref, cb2_ref,
               wt_ref, bt_ref,
               o_ref,
               act_ref, pad_ref):
        r = pl.program_id(1)

        @pl.when(r == 0)
        def _():
            # Zero halo once per group entry (interior overwritten each conv);
            # load the group input into the resident activation carry.
            pad_ref[...] = jnp.zeros(pad_ref.shape, pad_ref.dtype)
            act_ref[...] = x_ref[0].astype(act_ref.dtype)

        def conv3(inp_hwc, w, b):
            pad_ref[1:H + 1, 1:W + 1, :] = inp_hwc.astype(jnp.float32)
            return _im2col_conv3(pad_ref, w, b, H, W, C)

        xin = act_ref[...]                                           # (H,W,C) bf16
        xin_f32 = xin.astype(jnp.float32).reshape(HW, C)

        # RCAB body: conv3x3 -> ReLU -> conv3x3
        r1 = jnp.maximum(conv3(xin, w1_ref[0], b1_ref[0]), 0.0)      # (HW,C) f32
        r2 = conv3(r1.reshape(H, W, C), w2_ref[0], b2_ref[0])        # (HW,C) f32

        # Channel attention: avgpool -> FC -> ReLU -> FC -> sigmoid.
        # Tiny (1,C)@(C,Cr) matmuls: kept on the MXU, cost accepted (negligible).
        pooled = jnp.mean(r2, axis=0, keepdims=True)                 # (1,C) f32
        h = jnp.maximum(
            jnp.dot(pooled, cw1_ref[0],
                    preferred_element_type=jnp.float32) + cb1_ref[0], 0.0)
        y = jax.nn.sigmoid(
            jnp.dot(h, cw2_ref[0],
                    preferred_element_type=jnp.float32) + cb2_ref[0])  # (1,C)

        out = r2 * y + xin_f32                                       # RCAB skip
        out_bf = out.reshape(H, W, C).astype(act_ref.dtype)
        act_ref[...] = out_bf

        @pl.when(r == R - 1)
        def _():
            # Group-tail conv3x3 + ResidualGroup skip add, written once.
            t = conv3(out_bf, wt_ref[...], bt_ref[...])
            grp = t + x_ref[0].astype(jnp.float32).reshape(HW, C)
            o_ref[0] = grp.reshape(H, W, C).astype(o_ref.dtype)

    return kernel


@functools.lru_cache(maxsize=None)
def get_group_call(B, H, W, C, Cr, R):
    kernel = make_group_kernel(H, W, C, Cr, R)
    K9C = 9 * C

    def per_r(shape):
        n = len(shape)
        return pl.BlockSpec((1,) + shape, lambda b, r, _n=n: (r,) + (0,) * _n)

    def const(shape):
        n = len(shape)
        return pl.BlockSpec(shape, lambda b, r, _n=n: (0,) * _n)

    fn = pl.pallas_call(
        kernel,
        out_shape=jax.ShapeDtypeStruct((B, H, W, C), BF16),
        grid=(B, R),
        in_specs=[
            pl.BlockSpec((1, H, W, C), lambda b, r: (b, 0, 0, 0)),   # group input
            per_r((K9C, C)), per_r((1, C)),                          # RCAB conv1
            per_r((K9C, C)), per_r((1, C)),                          # RCAB conv2
            per_r((C, Cr)), per_r((1, Cr)),                          # CA fc1
            per_r((Cr, C)), per_r((1, C)),                           # CA fc2
            const((K9C, C)), const((1, C)),                          # group-tail conv
        ],
        out_specs=pl.BlockSpec((1, H, W, C), lambda b, r: (b, 0, 0, 0)),
        scratch_shapes=[
            pltpu.VMEM((H, W, C), BF16),           # activation carry across r
            pltpu.VMEM((H + 2, W + 2, C), F32),    # zero-padded conv input
        ],
        compiler_params=pltpu.CompilerParams(
            dimension_semantics=("parallel", "arbitrary")),
    )
    return jax.jit(fn)


# -----------------------------------------------------------------------------
# Fused tail kernel: [wm | res] concat (in-kernel) -> conv3x3 -> ReLU -> conv1x1
# -----------------------------------------------------------------------------
def make_tail_kernel(H, W, C, Nwm):
    HW = H * W
    Cin = Nwm + C

    def kernel(res_ref, wm_ref, w3_ref, b3_ref, w1_ref, b1_ref, o_ref, pad_ref):
        pad_ref[...] = jnp.zeros(pad_ref.shape, pad_ref.dtype)
        wm_b = jnp.broadcast_to(wm_ref[...], (H, W, Nwm)).astype(jnp.float32)
        full_in = jnp.concatenate(
            [wm_b, res_ref[0].astype(jnp.float32)], axis=-1)         # (H,W,Cin)
        pad_ref[1:H + 1, 1:W + 1, :] = full_in
        t = _im2col_conv3(pad_ref, w3_ref[...], b3_ref[...], H, W, Cin)
        t = jnp.maximum(t, 0.0)                                      # (HW,C) f32
        out = jnp.dot(t.astype(w1_ref.dtype), w1_ref[...],
                      preferred_element_type=jnp.float32) + b1_ref[...]
        o_ref[0] = out.reshape(H, W, 3).astype(o_ref.dtype)

    return kernel


@functools.lru_cache(maxsize=None)
def get_tail_call(B, H, W, C, Nwm):
    kernel = make_tail_kernel(H, W, C, Nwm)
    Cin = Nwm + C

    def const(shape):
        n = len(shape)
        return pl.BlockSpec(shape, lambda b, _n=n: (0,) * _n)

    fn = pl.pallas_call(
        kernel,
        out_shape=jax.ShapeDtypeStruct((B, H, W, 3), F32),
        grid=(B,),
        in_specs=[
            pl.BlockSpec((1, H, W, C), lambda b: (b, 0, 0, 0)),      # res
            pl.BlockSpec((1, 1, Nwm), lambda b: (b, 0, 0)),          # watermark
            const((9 * Cin, C)), const((1, C)),                      # tail conv3x3
            const((C, 3)), const((1, 3)),                            # tail conv1x1
        ],
        out_specs=pl.BlockSpec((1, H, W, 3), lambda b: (b, 0, 0, 0)),
        scratch_shapes=[pltpu.VMEM((H + 2, W + 2, Cin), F32)],
        compiler_params=pltpu.CompilerParams(
            dimension_semantics=("parallel",)),
    )
    return jax.jit(fn)


# -----------------------------------------------------------------------------
# Parameter initialization (deterministic, synthetic). Conv weights are stored
# directly in im2col layout (kh*kw*Cin, Cout), bf16; biases + CA FCs stay f32.
# -----------------------------------------------------------------------------
def init_params(key, cfg):
    C = cfg["n_feats"]
    Cr = max(C // cfg["reduction"], 1)
    Nwm = cfg["num_wm"]
    counter = [0]

    def nk():
        counter[0] += 1
        return jax.random.fold_in(key, counter[0])

    def conv_p(K, Cin, Cout, scale=0.05):
        w = jax.random.normal(nk(), (K, K, Cin, Cout), F32) * scale
        b = jax.random.normal(nk(), (1, Cout), F32) * scale
        return w.reshape(K * K * Cin, Cout).astype(BF16), b

    def fc_p(Cin, Cout, scale=0.05, dtype=F32):
        w = jax.random.normal(nk(), (Cin, Cout), F32) * scale
        b = jax.random.normal(nk(), (1, Cout), F32) * scale
        return w.astype(dtype), b

    params = {"head": conv_p(3, 3, C)}
    groups = []
    for _g in range(cfg["n_resgroups"]):
        w1s, b1s, w2s, b2s = [], [], [], []
        cw1s, cb1s, cw2s, cb2s = [], [], [], []
        for _r in range(cfg["n_resblocks"]):
            w1, b1 = conv_p(3, C, C); w1s.append(w1); b1s.append(b1)
            w2, b2 = conv_p(3, C, C); w2s.append(w2); b2s.append(b2)
            cw1, cb1 = fc_p(C, Cr); cw1s.append(cw1); cb1s.append(cb1)
            cw2, cb2 = fc_p(Cr, C); cw2s.append(cw2); cb2s.append(cb2)
        wt, bt = conv_p(3, C, C)
        groups.append({
            "w1": jnp.stack(w1s), "b1": jnp.stack(b1s),
            "w2": jnp.stack(w2s), "b2": jnp.stack(b2s),
            "cw1": jnp.stack(cw1s), "cb1": jnp.stack(cb1s),
            "cw2": jnp.stack(cw2s), "cb2": jnp.stack(cb2s),
            "wt": wt, "bt": bt,
        })
    params["groups"] = groups
    params["body_conv"] = conv_p(3, C, C)
    params["tail0"] = conv_p(3, C + Nwm, C)     # Cin order: [wm(Nwm), res(C)]
    params["tail1"] = fc_p(C, 3, dtype=BF16)    # 1x1 conv
    return params


# -----------------------------------------------------------------------------
# Full RCAN_WM forward.
# -----------------------------------------------------------------------------
def rcan_wm_forward(img_nchw, wm, params, cfg):
    B, _, H, W = img_nchw.shape
    C = cfg["n_feats"]
    Cr = max(C // cfg["reduction"], 1)
    Nwm = cfg["num_wm"]
    R = cfg["n_resblocks"]

    head = get_conv3_call(B, H, W, 3, C, False, False, BF16)
    group = get_group_call(B, H, W, C, Cr, R)
    body_tail = get_conv3_call(B, H, W, C, C, False, True, BF16)     # fused +x
    tail = get_tail_call(B, H, W, C, Nwm)

    # NCHW f32 -> NHWC bf16
    x_in = jnp.transpose(img_nchw, (0, 2, 3, 1)).astype(BF16)

    # head
    x = head(x_in, *params["head"])

    # body: 3 fused residual groups, then conv3x3 with fused body skip (+x)
    res = x
    for g in range(cfg["n_resgroups"]):
        gp = params["groups"][g]
        res = group(res, gp["w1"], gp["b1"], gp["w2"], gp["b2"],
                    gp["cw1"], gp["cb1"], gp["cw2"], gp["cb2"],
                    gp["wt"], gp["bt"])
    res = body_tail(res, x, *params["body_conv"])

    # tail: watermark broadcast + concat + conv3x3 + ReLU + conv1x1, all fused
    wm_flat = wm.reshape(B, 1, -1).astype(F32)                       # (B,1,Nwm)
    out = tail(res, wm_flat, params["tail0"][0], params["tail0"][1],
               params["tail1"][0], params["tail1"][1])

    # NHWC -> NCHW
    return jnp.transpose(out, (0, 3, 1, 2))


if __name__ == "__main__":
    key = jax.random.PRNGKey(0)
    B, H_img, W_img = 2, 16, 16
    H_wm, W_wm = 2, 2
    cfg = dict(
        n_feats=64,
        reduction=16,
        n_resgroups=3,
        n_resblocks=16,
        num_wm=H_wm * W_wm,
    )

    k_img, k_wm, k_par = jax.random.split(key, 3)
    img = jax.random.normal(k_img, (B, 3, H_img, W_img), F32)
    wm = jax.random.uniform(k_wm, (B, H_wm, W_wm), F32)
    params = init_params(k_par, cfg)

    out = rcan_wm_forward(img, wm, params, cfg)
    jax.block_until_ready(out)
    assert out.shape == (B, 3, H_img, W_img), out.shape
    assert out.dtype == F32
    print("KERNEL_OK")
</pallas_src>

<mosaic_0001>
module attributes {stable_mosaic.version = 11 : i64} {
  func.func @kernel(%arg0: i32, %arg1: memref<1x16x16x3xbf16, #tpu.memory_space<vmem>>, %arg2: memref<27x64xbf16, #tpu.memory_space<vmem>>, %arg3: memref<1x64xf32, #tpu.memory_space<vmem>>, %arg4: memref<1x16x16x64xbf16, #tpu.memory_space<vmem>>, %arg5: memref<18x18x3xf32, #tpu.memory_space<vmem>>) attributes {dimension_semantics = [#tpu.dimension_semantics<parallel>], iteration_bounds = array<i64: 2>, scalar_prefetch = 0 : i64, scratch_operands = 1 : i64, tpu.core_type = #tpu.core_type<tc>, window_params = [{transform_indices = @transform_0, window_bounds = array<i64: 1, 16, 16, 3>}, {pipeline_mode = #tpu.pipeline_mode<synchronous>, transform_indices = @transform_1, window_bounds = array<i64: 27, 64>}, {pipeline_mode = #tpu.pipeline_mode<synchronous>, transform_indices = @transform_2, window_bounds = array<i64: 1, 64>}, {transform_indices = @transform_3, window_bounds = array<i64: 1, 16, 16, 64>}]} {
    %cst = arith.constant 0.000000e+00 : f32
    %0 = vector.broadcast %cst : f32 to vector<18x18x3xf32>
    %c0 = arith.constant 0 : index
    %c0_0 = arith.constant 0 : index
    %c0_1 = arith.constant 0 : index
    %1 = vector.load %arg5[%c0, %c0_0, %c0_1] : memref<18x18x3xf32, #tpu.memory_space<vmem>>, vector<18x18x3xf32>
    tpu.vector_store %arg5[%c0, %c0_0, %c0_1], %0 {strides = array<i32>} : memref<18x18x3xf32, #tpu.memory_space<vmem>>, vector<18x18x3xf32>,
    %c0_2 = arith.constant 0 : index
    %c0_3 = arith.constant 0 : index
    %c0_4 = arith.constant 0 : index
    %c0_5 = arith.constant 0 : index
    %2 = vector.load %arg1[%c0_2, %c0_3, %c0_4, %c0_5] : memref<1x16x16x3xbf16, #tpu.memory_space<vmem>>, vector<1x16x16x3xbf16>
    %3 = vector.shape_cast %2 : vector<1x16x16x3xbf16> to vector<16x16x3xbf16>
    %4 = arith.extf %3 : vector<16x16x3xbf16> to vector<16x16x3xf32>
    %c1 = arith.constant 1 : index
    %c1_6 = arith.constant 1 : index
    %c0_7 = arith.constant 0 : index
    %5 = vector.load %arg5[%c1, %c1_6, %c0_7] : memref<18x18x3xf32, #tpu.memory_space<vmem>>, vector<16x16x3xf32>
    tpu.vector_store %arg5[%c1, %c1_6, %c0_7], %4 {strides = array<i32>} : memref<18x18x3xf32, #tpu.memory_space<vmem>>, vector<16x16x3xf32>,
    %c0_8 = arith.constant 0 : index
    %c0_9 = arith.constant 0 : index
    %6 = vector.load %arg2[%c0_8, %c0_9] : memref<27x64xbf16, #tpu.memory_space<vmem>>, vector<27x64xbf16>
    %c0_10 = arith.constant 0 : index
    %c0_11 = arith.constant 0 : index
    %7 = vector.load %arg3[%c0_10, %c0_11] : memref<1x64xf32, #tpu.memory_space<vmem>>, vector<1x64xf32>
    %c0_12 = arith.constant 0 : index
    %c0_13 = arith.constant 0 : index
    %c0_14 = arith.constant 0 : index
    %8 = vector.load %arg5[%c0_12, %c0_13, %c0_14] : memref<18x18x3xf32, #tpu.memory_space<vmem>>, vector<16x16x3xf32>
    %9 = vector.shape_cast %8 : vector<16x16x3xf32> to vector<256x3xf32>
    %c0_15 = arith.constant 0 : index
    %c1_16 = arith.constant 1 : index
    %c0_17 = arith.constant 0 : index
    %10 = vector.load %arg5[%c0_15, %c1_16, %c0_17] : memref<18x18x3xf32, #tpu.memory_space<vmem>>, vector<16x16x3xf32>
    %11 = vector.shape_cast %10 : vector<16x16x3xf32> to vector<256x3xf32>
    %c0_18 = arith.constant 0 : index
    %c2 = arith.constant 2 : index
    %c0_19 = arith.constant 0 : index
    %12 = vector.load %arg5[%c0_18, %c2, %c0_19] : memref<18x18x3xf32, #tpu.memory_space<vmem>>, vector<16x16x3xf32>
    %13 = vector.shape_cast %12 : vector<16x16x3xf32> to vector<256x3xf32>
    %c1_20 = arith.constant 1 : index
    %c0_21 = arith.constant 0 : index
    %c0_22 = arith.constant 0 : index
    %14 = vector.load %arg5[%c1_20, %c0_21, %c0_22] : memref<18x18x3xf32, #tpu.memory_space<vmem>>, vector<16x16x3xf32>
    %15 = vector.shape_cast %14 : vector<16x16x3xf32> to vector<256x3xf32>
    %c1_23 = arith.constant 1 : index
    %c1_24 = arith.constant 1 : index
    %c0_25 = arith.constant 0 : index
    %16 = vector.load %arg5[%c1_23, %c1_24, %c0_25] : memref<18x18x3xf32, #tpu.memory_space<vmem>>, vector<16x16x3xf32>
    %17 = vector.shape_cast %16 : vector<16x16x3xf32> to vector<256x3xf32>
    %c1_26 = arith.constant 1 : index
    %c2_27 = arith.constant 2 : index
    %c0_28 = arith.constant 0 : index
    %18 = vector.load %arg5[%c1_26, %c2_27, %c0_28] : memref<18x18x3xf32, #tpu.memory_space<vmem>>, vector<16x16x3xf32>
    %19 = vector.shape_cast %18 : vector<16x16x3xf32> to vector<256x3xf32>
    %c2_29 = arith.constant 2 : index
    %c0_30 = arith.constant 0 : index
    %c0_31 = arith.constant 0 : index
    %20 = vector.load %arg5[%c2_29, %c0_30, %c0_31] : memref<18x18x3xf32, #tpu.memory_space<vmem>>, vector<16x16x3xf32>
    %21 = vector.shape_cast %20 : vector<16x16x3xf32> to vector<256x3xf32>
    %c2_32 = arith.constant 2 : index
    %c1_33 = arith.constant 1 : index
    %c0_34 = arith.constant 0 : index
    %22 = vector.load %arg5[%c2_32, %c1_33, %c0_34] : memref<18x18x3xf32, #tpu.memory_space<vmem>>, vector<16x16x3xf32>
    %23 = vector.shape_cast %22 : vector<16x16x3xf32> to vector<256x3xf32>
    %c2_35 = arith.constant 2 : index
    %c2_36 = arith.constant 2 : index
    %c0_37 = arith.constant 0 : index
    %24 = vector.load %arg5[%c2_35, %c2_36, %c0_37] : memref<18x18x3xf32, #tpu.memory_space<vmem>>, vector<16x16x3xf32>
    %25 = vector.shape_cast %24 : vector<16x16x3xf32> to vector<256x3xf32>
    %26 = tpu.concatenate %9, %11, %13, %15, %17, %19, %21, %23, %25 in 1 : vector<256x3xf32>, vector<256x3xf32>, vector<256x3xf32>, vector<256x3xf32>, vector<256x3xf32>, vector<256x3xf32>, vector<256x3xf32>, vector<256x3xf32>, vector<256x3xf32> -> vector<256x27xf32>
    %27 = arith.truncf %26 : vector<256x27xf32> to vector<256x27xbf16>
    %cst_38 = arith.constant dense<0.000000e+00> : vector<256x64xf32>
    %28 = tpu.matmul %27, %6, %cst_38 {dimension_numbers = #tpu.dot_dimension_numbers<[1], [0], [0], [1], [0, 0, 1, 1], [], []>} : vector<256x27xbf16>, vector<27x64xbf16>, vector<256x64xf32> -> vector<256x64xf32>
    %29 = vector.broadcast %7 : vector<1x64xf32> to vector<256x64xf32>
    %30 = arith.addf %28, %29 : vector<256x64xf32>
    %31 = vector.shape_cast %30 : vector<256x64xf32> to vector<16x16x64xf32>
    %32 = arith.truncf %31 : vector<16x16x64xf32> to vector<16x16x64xbf16>
    %c0_39 = arith.constant 0 : index
    %c0_40 = arith.constant 0 : index
    %c0_41 = arith.constant 0 : index
    %c0_42 = arith.constant 0 : index
    %33 = vector.load %arg4[%c0_39, %c0_40, %c0_41, %c0_42] : memref<1x16x16x64xbf16, #tpu.memory_space<vmem>>, vector<1x16x16x64xbf16>
    %34 = vector.shape_cast %33 : vector<1x16x16x64xbf16> to vector<16x16x64xbf16>
    %35 = vector.shape_cast %32 : vector<16x16x64xbf16> to vector<1x16x16x64xbf16>
    tpu.vector_store %arg4[%c0_39, %c0_40, %c0_41, %c0_42], %35 {strides = array<i32>} : memref<1x16x16x64xbf16, #tpu.memory_space<vmem>>, vector<1x16x16x64xbf16>,
    return
  }
  func.func @transform_0(%arg0: i32) -> (i32, i32, i32, i32) {
    %c0_i32 = arith.constant 0 : i32
    %c0_i32_0 = arith.constant 0 : i32
    %c0_i32_1 = arith.constant 0 : i32
    %c0_i32_2 = arith.constant 0 : i32
    return %arg0, %c0_i32, %c0_i32_0, %c0_i32_1 : i32, i32, i32, i32
  }
  func.func @transform_1(%arg0: i32) -> (i32, i32) {
    %c0_i32 = arith.constant 0 : i32
    %c0_i32_0 = arith.constant 0 : i32
    %c0_i32_1 = arith.constant 0 : i32
    return %c0_i32, %c0_i32_0 : i32, i32
  }
  func.func @transform_2(%arg0: i32) -> (i32, i32) {
    %c0_i32 = arith.constant 0 : i32
    %c0_i32_0 = arith.constant 0 : i32
    %c0_i32_1 = arith.constant 0 : i32
    return %c0_i32, %c0_i32_0 : i32, i32
  }
  func.func @transform_3(%arg0: i32) -> (i32, i32, i32, i32) {
    %c0_i32 = arith.constant 0 : i32
    %c0_i32_0 = arith.constant 0 : i32
    %c0_i32_1 = arith.constant 0 : i32
    %c0_i32_2 = arith.constant 0 : i32
    return %arg0, %c0_i32, %c0_i32_0, %c0_i32_1 : i32, i32, i32, i32
  }
}

</mosaic_0001>

<bundles_post_ra>
// kernel: tpu_custom_call.1
= control target key start
LH: loop header
LB: loop body
LE: loop exit
PB: predicated region body
PF: predicated region fallthrough
CT: control target
= control target key end

     0   :  { %8 = vsyncpa [#allocation4], 0  ;;  %s4545_s0 = inlined_call_operand.vmem [shape: bf16[2,16,16,3], index: 0, kind: input, shape index: {}]   ;;  %s4546_s1 = inlined_call_operand.vmem [shape: bf16[27,64], index: 1, kind: input, shape index: {}]   ;;  %s4547_s2 = inlined_call_operand.vmem [shape: f32[1,64], index: 2, kind: input, shape index: {}]   ;;  %s4548_s3 = inlined_call_operand.hbm [shape: bf16[2,16,16,64], index: 3, kind: output, shape index: {}]  }
   0x1   :  { %10 = vsyncpa [#allocation4 + $0x1], 0  ;;  %s3135_s12 = smov 0   ;;  %s3137_s13 = smov 0  }
   0x2   :  { %s3139_s14 = smov 0   ;;  %s3141_s15 = smov 0  }
   0x3 LB: > { %s3156_s16 = sadd.s32 4294967295, %s3101_s15   ;;  %s2222_s17 = sadd.s32 4294967294, %s3101_s15   ;;  %s3101_s15 = sphi %s3141_s15, %s4614_s15   ;;  %s3097_s14 = sphi %s3139_s14, %s4613_s14   ;;  %s3093_s13 = sphi %s3137_s13, %s4612_s13   ;;  %s3089_s12 = sphi %s3135_s12, %s4611_s12  }
   0x4   : > { %s3160_s18 = sadd.s32 1, %s3101_s15   ;;  %s91_s19 = sadd.s32 1, %s3097_s14 }
   0x5   : > { %s88_s20 = ssub.s32 %s3101_s15, %s3160_s18  ;;  %p101_p0 = scmp.ne.s32.totalorder %s3097_s14, %s3093_s13 }
   0x6   : > { %p89_p1 = scmp.eq.s32.totalorder %s88_s20, 0  ;;  %p102_p2 = scmp.eq.s32.totalorder %s3156_s16, 1 }
   0x7   : > { %p107_p3 = scmp.ne.s32.totalorder %s3093_s13, %s3089_s12  ;;  %p108_p4 = scmp.eq.s32.totalorder %s2222_s17, 1 }
   0x8   : > { %s3171_s21 = scalar_select %p89_p1, %s3097_s14, %s91_s19  }
   0x9   : > { %p3173_p5 = por %p102_p2, %p101_p0  ;;  %p3177_p6 = por %p108_p4, %p107_p3 }
   0xa   : > { %p2225_p7 = scmp.ge.s32.totalorder %s3101_s15, 1  ;;  %p140_p8 = scmp.lt.s32.totalorder %s3101_s15, 3 }
   0xc   : > { %p141_p9 = pnand %p2225_p7, %p140_p8 }
   0xe   : > { %144 = sbr.rel (%p141_p9) target bundleno = 685 (0x2ad), region = 32 }
  0x13   : > { %vm170_vm0 = vcmask 23552   ;;  %vm173_vm1 = vcmask 17408   ;;  %v3103_v0 = vmov 0.0   ;;  %s3104_s24 = smov 3   ;;  %p164_p10 = scmp.lt.s32.totalorder %s3156_s16, 1  ;;  %vm1673_vm2 = vcmask 48128  }
  0x14   : > { %171 = vst.msk [vmem:[#allocation2] sm:$0xff] %vm170_vm0, %v3103_v0  ;;  %s3105_s30 = smov 6   ;;  %s3106_s4 = smov 9   ;;  %vm1706_vm3 = vcmask 72704   ;;  %vm1739_vm4 = vcmask 97280   ;;  %vm1772_vm5 = vcmask 121856  }
  0x15   : > { %172 = vst.msk [vmem:[#allocation2 + $0x8] sm:$0xff] %vm170_vm0, %v3103_v0  ;;  %s165_s25 = scalar_select %p164_p10, %s3156_s16, 1  ;;  %vm1805_vm6 = vcmask 146432   ;;  %vm1983_vm7 = vcmask 1044480   ;;  %vm1984_vm8 = vcmask 1045504   ;;  %vm1871_vm9 = vcmask 195584  }
  0x16   : > { %174 = vst.msk [vmem:[#allocation2 + $0x10] sm:$0x3] %vm173_vm1, %v3103_v0  ;;  %s3107_s5 = smov 12   ;;  %s3108_s6 = smov 15   ;;  %vm1838_vm10 = vcmask 171008   ;;  %vm1934_vm11 = vcmask 220160  }
  0x17   : > { %175 = vst.msk [vmem:[#allocation2 + $0x18] sm:$0xff] %vm170_vm0, %v3103_v0  ;;  %s2258_s26 = sshll.u32 %s165_s25, 7  ;;  %s3109_s7 = smov 18   ;;  %vm2111_vm12 = vcmask 519168  }
  0x18   : > { %176 = vst.msk [vmem:[#allocation2 + $0x20] sm:$0xff] %vm170_vm0, %v3103_v0  ;;  %s3279_s29 = scalar_lea.vmem %s4545_s0, %s2258_s26  ;;  %s3110_s8 = smov 21  }
  0x19   : > { %177 = vst.msk [vmem:[#allocation2 + $0x28] sm:$0x3] %vm173_vm1, %v3103_v0  ;;  %v2328_v4 = vld [vmem:[%s3279_s29 + $0x18] sm:$0xff]   ;;  %v2326_v5 = vld [vmem:[%s3279_s29 + $0x8] sm:$0xff]   ;;  %v2263_v8 = vld [vmem:[%s3279_s29] sm:$0xff]   ;;  %s3111_s9 = smov 24  }
  0x1a   : > { %178 = vst.msk [vmem:[#allocation2 + $0x30] sm:$0xff] %vm170_vm0, %v3103_v0  ;;  %v2276_v6 = vunpack.c.l.bf16 %v2328_v4  ;;  %v2277_v7 = vunpack.c.h.bf16 %v2328_v4  ;;  %v2268_v9 = vunpack.c.l.bf16 %v2326_v5  ;;  %v2269_v10 = vunpack.c.h.bf16 %v2326_v5  ;;  %v2329_v11 = vld [vmem:[%s3279_s29 + $0x20] sm:$0xff]   ;;  %v2327_v14 = vld [vmem:[%s3279_s29 + $0x10] sm:$0xff]   ;;  %v2330_v17 = vld [vmem:[%s3279_s29 + $0x28] sm:$0xff]   ;;  %s161_s25 = sand.u32 1, %s3093_s13   ;;  %s3059_s19 = scalar_lea.hbm %s4548_s3, 256 }
  0x1b   : > { %179 = vst.msk [vmem:[#allocation2 + $0x38] sm:$0xff] %vm170_vm0, %v3103_v0  ;;  %v2264_v12 = vunpack.c.l.bf16 %v2263_v8  ;;  %v2265_v13 = vunpack.c.h.bf16 %v2263_v8  ;;  %v2280_v15 = vunpack.c.l.bf16 %v2329_v11  ;;  %v2281_v16 = vunpack.c.h.bf16 %v2329_v11  ;;  %v2332_v20 = vld [vmem:[%s3279_s29 + $0x38] sm:$0xff]   ;;  %v2331_v24 = vld [vmem:[%s3279_s29 + $0x30] sm:$0xff]   ;;  %v2333_v30 = vld [vmem:[%s3279_s29 + $0x40] sm:$0xff]   ;;  %s2226_s28 = sshll.u32 %s161_s25, 7 }
  0x1c   : > { %v360_v1 = vld [vmem:[#allocation2 + $0x1] sm:$0xff]  ;;  %180 = vst.msk [vmem:[#allocation2 + $0x40] sm:$0x3] %vm173_vm1, %v3103_v0  ;;  %v2272_v18 = vunpack.c.l.bf16 %v2327_v14  ;;  %v2273_v19 = vunpack.c.h.bf16 %v2327_v14  ;;  %v2284_v21 = vunpack.c.l.bf16 %v2330_v17  ;;  %v2285_v23 = vunpack.c.h.bf16 %v2330_v17  ;;  %v2335_v36 = vld [vmem:[%s3279_s29 + $0x50] sm:$0xff]   ;;  %v2336_v48 = vld [vmem:[%s3279_s29 + $0x58] sm:$0xff]  }
  0x1d   : > { %v361_v2 = vld [vmem:[#allocation2 + $0x9] sm:$0xff]  ;;  %181 = vst.msk [vmem:[#allocation2 + $0x48] sm:$0xff] %vm170_vm0, %v3103_v0  ;;  %v2292_v26 = vunpack.c.l.bf16 %v2332_v20  ;;  %v2293_v29 = vunpack.c.h.bf16 %v2332_v20  ;;  %v2288_v32 = vunpack.c.l.bf16 %v2331_v24  ;;  %v2289_v35 = vunpack.c.h.bf16 %v2331_v24  ;;  %v2337_v59 = vld [vmem:[%s3279_s29 + $0x60] sm:$0xff]  }
  0x1e   : > { %v2398_v3 = vpack.i.bf16 %v361_v2, %v360_v1  ;;  %182 = vst.msk [vmem:[#allocation2 + $0x50] sm:$0xff] %vm170_vm0, %v3103_v0  ;;  %v2296_v38 = vunpack.c.l.bf16 %v2333_v30  ;;  %v2297_v41 = vunpack.c.h.bf16 %v2333_v30  ;;  %v2334_v42 = vld [vmem:[%s3279_s29 + $0x48] sm:$0xff]   ;;  %v2304_v44 = vunpack.c.l.bf16 %v2335_v36 }
  0x1f   : > { %183 = vst.msk [vmem:[#allocation2 + $0x58] sm:$0x3] %vm173_vm1, %v3103_v0  ;;  %v2305_v47 = vunpack.c.h.bf16 %v2335_v36  ;;  %v2300_v50 = vunpack.c.l.bf16 %v2334_v42  ;;  %v2301_v53 = vunpack.c.h.bf16 %v2334_v42  ;;  %v2338_v54 = vld [vmem:[%s3279_s29 + $0x68] sm:$0xff]   ;;  %v2308_v56 = vunpack.c.l.bf16 %v2336_v48 }
  0x20   : > { %2399 = vrot.lane.b32.xlu0 %v2398_v3, %s3104_s24  ;;  %184 = vst.msk [vmem:[#allocation2 + $0x60] sm:$0xff] %vm170_vm0, %v3103_v0  ;;  %v2309_v58 = vunpack.c.h.bf16 %v2336_v48  ;;  %v2316_v62 = vunpack.c.l.bf16 %v2338_v54  ;;  %v2317_v63 = vunpack.c.h.bf16 %v2338_v54  ;;  %v2312_v3 = vunpack.c.l.bf16 %v2337_v59 }
  0x21   : > { %185 = vst.msk [vmem:[#allocation2 + $0x68] sm:$0xff] %vm170_vm0, %v3103_v0  ;;  %v2313_v5 = vunpack.c.h.bf16 %v2337_v59 }
  0x22   : > { %186 = vst.msk [vmem:[#allocation2 + $0x70] sm:$0x3] %vm173_vm1, %v3103_v0 }
  0x23   : > { %187 = vst.msk [vmem:[#allocation2 + $0x78] sm:$0xff] %vm170_vm0, %v3103_v0 }
  0x24   : > { %188 = vst.msk [vmem:[#allocation2 + $0x80] sm:$0xff] %vm170_vm0, %v3103_v0 }
  0x25   : > { %189 = vst.msk [vmem:[#allocation2 + $0x88] sm:$0x3] %vm173_vm1, %v3103_v0 }
  0x26   : > { %190 = vst.msk [vmem:[#allocation2 + $0x90] sm:$0xff] %vm170_vm0, %v3103_v0 }
  0x27   : > { %191 = vst.msk [vmem:[#allocation2 + $0x98] sm:$0xff] %vm170_vm0, %v3103_v0 }
  0x28   : > { %192 = vst.msk [vmem:[#allocation2 + $0xa0] sm:$0x3] %vm173_vm1, %v3103_v0 }
  0x29   : > { %193 = vst.msk [vmem:[#allocation2 + $0xa8] sm:$0xff] %vm170_vm0, %v3103_v0 }
  0x2a   : > { %194 = vst.msk [vmem:[#allocation2 + $0xb0] sm:$0xff] %vm170_vm0, %v3103_v0 }
  0x2b   : > { %195 = vst.msk [vmem:[#allocation2 + $0xb8] sm:$0x3] %vm173_vm1, %v3103_v0 }
  0x2c   : > { %196 = vst.msk [vmem:[#allocation2 + $0xc0] sm:$0xff] %vm170_vm0, %v3103_v0 }
  0x2d   : > { %197 = vst.msk [vmem:[#allocation2 + $0xc8] sm:$0xff] %vm170_vm0, %v3103_v0 }
  0x2e   : > { %198 = vst.msk [vmem:[#allocation2 + $0xd0] sm:$0x3] %vm173_vm1, %v3103_v0 }
  0x2f   : > { %199 = vst.msk [vmem:[#allocation2 + $0xd8] sm:$0xff] %vm170_vm0, %v3103_v0 }
  0x30   : > { %200 = vst.msk [vmem:[#allocation2 + $0xe0] sm:$0xff] %vm170_vm0, %v3103_v0 }
  0x31   : > { %201 = vst.msk [vmem:[#allocation2 + $0xe8] sm:$0x3] %vm173_vm1, %v3103_v0 }
  0x32   : > { %202 = vst.msk [vmem:[#allocation2 + $0xf0] sm:$0xff] %vm170_vm0, %v3103_v0 }
  0x33   : > { %203 = vst.msk [vmem:[#allocation2 + $0xf8] sm:$0xff] %vm170_vm0, %v3103_v0 }
  0x34   : > { %204 = vst.msk [vmem:[#allocation2 + $0x100] sm:$0x3] %vm173_vm1, %v3103_v0 }
  0x35   : > { %205 = vst.msk [vmem:[#allocation2 + $0x108] sm:$0xff] %vm170_vm0, %v3103_v0 }
  0x36   : > { %206 = vst.msk [vmem:[#allocation2 + $0x110] sm:$0xff] %vm170_vm0, %v3103_v0 }
  0x37   : > { %207 = vst.msk [vmem:[#allocation2 + $0x118] sm:$0x3] %vm173_vm1, %v3103_v0 }
  0x38   : > { %208 = vst.msk [vmem:[#allocation2 + $0x120] sm:$0xff] %vm170_vm0, %v3103_v0 }
  0x39   : > { %209 = vst.msk [vmem:[#allocation2 + $0x128] sm:$0xff] %vm170_vm0, %v3103_v0 }
  0x3a   : > { %210 = vst.msk [vmem:[#allocation2 + $0x130] sm:$0x3] %vm173_vm1, %v3103_v0 }
  0x3b   : > { %211 = vst.msk [vmem:[#allocation2 + $0x138] sm:$0xff] %vm170_vm0, %v3103_v0 }
  0x3c   : > { %212 = vst.msk [vmem:[#allocation2 + $0x140] sm:$0xff] %vm170_vm0, %v3103_v0 }
  0x3d   : > { %213 = vst.msk [vmem:[#allocation2 + $0x148] sm:$0x3] %vm173_vm1, %v3103_v0 }
  0x3e   : > { %214 = vst.msk [vmem:[#allocation2 + $0x150] sm:$0xff] %vm170_vm0, %v3103_v0 }
  0x3f   : > { %215 = vst.msk [vmem:[#allocation2 + $0x158] sm:$0xff] %vm170_vm0, %v3103_v0 }
  0x40   : > { %216 = vst.msk [vmem:[#allocation2 + $0x160] sm:$0x3] %vm173_vm1, %v3103_v0 }
  0x41   : > { %217 = vst.msk [vmem:[#allocation2 + $0x168] sm:$0xff] %vm170_vm0, %v3103_v0 }
  0x42   : > { %218 = vst.msk [vmem:[#allocation2 + $0x170] sm:$0xff] %vm170_vm0, %v3103_v0 }
  0x43   : > { %219 = vst.msk [vmem:[#allocation2 + $0x178] sm:$0x3] %vm173_vm1, %v3103_v0 }
  0x44   : > { %220 = vst.msk [vmem:[#allocation2 + $0x180] sm:$0xff] %vm170_vm0, %v3103_v0 }
  0x45   : > { %221 = vst.msk [vmem:[#allocation2 + $0x188] sm:$0xff] %vm170_vm0, %v3103_v0 }
  0x46   : > { %222 = vst.msk [vmem:[#allocation2 + $0x190] sm:$0x3] %vm173_vm1, %v3103_v0 }
  0x47   : > { %223 = vst.msk [vmem:[#allocation2 + $0x198] sm:$0xff] %vm170_vm0, %v3103_v0 }
  0x48   : > { %224 = vst.msk [vmem:[#allocation2 + $0x1a0] sm:$0xff] %vm170_vm0, %v3103_v0 }
  0x49   : > { %225 = vst.msk [vmem:[#allocation2 + $0x1a8] sm:$0x3] %vm173_vm1, %v3103_v0  ;;  %v2339_v0 = vld [vmem:[%s3279_s29 + $0x70] sm:$0xff]  }
  0x4a   : > { %297 = vst.msk [vmem:[#allocation2 + $0x61] sm:$0xff] %vm170_vm0, %v2276_v6  ;;  %v2320_v8 = vunpack.c.l.bf16 %v2339_v0 }
  0x4b   : > { %298 = vst.msk [vmem:[#allocation2 + $0x69] sm:$0xff] %vm170_vm0, %v2277_v7 }
  0x4c   : > { %293 = vst.msk [vmem:[#allocation2 + $0x31] sm:$0xff] %vm170_vm0, %v2268_v9 }
  0x4d   : > { %294 = vst.msk [vmem:[#allocation2 + $0x39] sm:$0xff] %vm170_vm0, %v2269_v10  ;;  %v2321_v10 = vunpack.c.h.bf16 %v2339_v0 }
  0x4e   : > { %291 = vst.msk [vmem:[#allocation2 + $0x19] sm:$0xff] %vm170_vm0, %v2264_v12 }
  0x4f   : > { %292 = vst.msk [vmem:[#allocation2 + $0x21] sm:$0xff] %vm170_vm0, %v2265_v13 }
  0x50   : > { %299 = vst.msk [vmem:[#allocation2 + $0x79] sm:$0xff] %vm170_vm0, %v2280_v15 }
  0x51   : > { %v368_v22 = vld [vmem:[#allocation2 + $0x61] sm:$0xff]  ;;  %300 = vst.msk [vmem:[#allocation2 + $0x81] sm:$0xff] %vm170_vm0, %v2281_v16 }
  0x52   : > { %v369_v25 = vld [vmem:[#allocation2 + $0x69] sm:$0xff]  ;;  %295 = vst.msk [vmem:[#allocation2 + $0x49] sm:$0xff] %vm170_vm0, %v2272_v18 }
  0x53   : > { %v3316_v27 = vpack.i.bf16 %v369_v25, %v368_v22  ;;  %v364_v28 = vld [vmem:[#allocation2 + $0x31] sm:$0xff]  ;;  %296 = vst.msk [vmem:[#allocation2 + $0x51] sm:$0xff] %vm170_vm0, %v2273_v19  ;;  %v400_v42 = vld [vmem:[#allocation2 + $0x62] sm:$0xff] }
  0x54   : > { %v365_v31 = vld [vmem:[#allocation2 + $0x39] sm:$0xff]  ;;  %301 = vst.msk [vmem:[#allocation2 + $0x91] sm:$0xff] %vm170_vm0, %v2284_v21 }
  0x55   : > { %2419 = vrot.lane.b32.xlu2 %v3316_v27, %s3104_s24  ;;  %v3323_v33 = vpack.i.bf16 %v365_v31, %v364_v28  ;;  %v362_v34 = vld [vmem:[#allocation2 + $0x19] sm:$0xff]  ;;  %302 = vst.msk [vmem:[#allocation2 + $0x99] sm:$0xff] %vm170_vm0, %v2285_v23 }
  0x56   : > { %v363_v37 = vld [vmem:[#allocation2 + $0x21] sm:$0xff]  ;;  %305 = vst.msk [vmem:[#allocation2 + $0xc1] sm:$0xff] %vm170_vm0, %v2292_v26 }
  0x57   : > { %2409 = vrot.lane.b32.xlu1 %v3323_v33, %s3104_s24  ;;  %v3330_v39 = vpack.i.bf16 %v363_v37, %v362_v34  ;;  %v370_v40 = vld [vmem:[#allocation2 + $0x79] sm:$0xff]  ;;  %306 = vst.msk [vmem:[#allocation2 + $0xc9] sm:$0xff] %vm170_vm0, %v2293_v29  ;;  %v392_v34 = vld [vmem:[#allocation2 + $0x2] sm:$0xff] }
  0x58   : > { %v371_v43 = vld [vmem:[#allocation2 + $0x81] sm:$0xff]  ;;  %303 = vst.msk [vmem:[#allocation2 + $0xa9] sm:$0xff] %vm170_vm0, %v2288_v32  ;;  %v396_v37 = vld [vmem:[#allocation2 + $0x32] sm:$0xff] }
  0x59   : > { %2404 = vrot.lane.b32.xlu0 %v3330_v39, %s3104_s24  ;;  %v3337_v45 = vpack.i.bf16 %v371_v43, %v370_v40  ;;  %v366_v46 = vld [vmem:[#allocation2 + $0x49] sm:$0xff]  ;;  %304 = vst.msk [vmem:[#allocation2 + $0xb1] sm:$0xff] %vm170_vm0, %v2289_v35  ;;  %v394_v31 = vld [vmem:[#allocation2 + $0x1a] sm:$0xff] }
  0x5a   : > { %v367_v49 = vld [vmem:[#allocation2 + $0x51] sm:$0xff]  ;;  %307 = vst.msk [vmem:[#allocation2 + $0xd9] sm:$0xff] %vm170_vm0, %v2296_v38  ;;  %v395_v32 = vld [vmem:[#allocation2 + $0x22] sm:$0xff]  ;;  %v397_v38 = vld [vmem:[#allocation2 + $0x3a] sm:$0xff] }
  0x5b   : > { %v3342_v51 = vpack.i.bf16 %v367_v49, %v366_v46  ;;  %v372_v52 = vld [vmem:[#allocation2 + $0x91] sm:$0xff]  ;;  %308 = vst.msk [vmem:[#allocation2 + $0xe1] sm:$0xff] %vm170_vm0, %v2297_v41  ;;  %v3404_v36 = vpack.i.bf16 %v395_v32, %v394_v31  ;;  %v3408_v41 = vpack.i.bf16 %v397_v38, %v396_v37  ;;  %v402_v48 = vld [vmem:[#allocation2 + $0x7a] sm:$0xff]  ;;  %v403_v49 = vld [vmem:[#allocation2 + $0x82] sm:$0xff] }
  0x5c   : > { %v373_v55 = vld [vmem:[#allocation2 + $0x99] sm:$0xff]  ;;  %311 = vst.msk [vmem:[#allocation2 + $0x109] sm:$0xff] %vm170_vm0, %v2304_v44  ;;  %v393_v35 = vld [vmem:[#allocation2 + $0xa] sm:$0xff] }
  0x5d   : > { %2424 = vrot.lane.b32.xlu2 %v3337_v45, %s3104_s24  ;;  %v3349_v57 = vpack.i.bf16 %v373_v55, %v372_v52  ;;  %312 = vst.msk [vmem:[#allocation2 + $0x111] sm:$0xff] %vm170_vm0, %v2305_v47  ;;  %v376_v60 = vld [vmem:[#allocation2 + $0xc1] sm:$0xff]  ;;  %v2478_v40 = vpack.i.bf16 %v393_v35, %v392_v34  ;;  %v401_v43 = vld [vmem:[#allocation2 + $0x6a] sm:$0xff]  ;;  %v399_v46 = vld [vmem:[#allocation2 + $0x52] sm:$0xff]  ;;  %v3419_v52 = vpack.i.bf16 %v403_v49, %v402_v48 }
  0x5e   : > { %v377_v61 = vld [vmem:[#allocation2 + $0xc9] sm:$0xff]  ;;  %309 = vst.msk [vmem:[#allocation2 + $0xf1] sm:$0xff] %vm170_vm0, %v2300_v50  ;;  %v3413_v47 = vpack.i.bf16 %v401_v43, %v400_v42  ;;  %v404_v55 = vld [vmem:[#allocation2 + $0x92] sm:$0xff]  ;;  %v430_v43 = vld [vmem:[#allocation2 + $0x60] sm:$0xff] }
  0x5f   : > { %2414 = vrot.lane.b32.xlu1 %v3342_v51, %s3104_s24  ;;  %310 = vst.msk [vmem:[#allocation2 + $0xf9] sm:$0xff] %vm170_vm0, %v2301_v53  ;;  %v374_v1 = vld [vmem:[#allocation2 + $0xa9] sm:$0xff]  ;;  %v3361_v4 = vpack.i.bf16 %v377_v61, %v376_v60  ;;  %v3469_v34 = vld [vmem:[#allocation2 + $0x38] sm:$0xff] }
  0x60   : > { %v375_v2 = vld [vmem:[#allocation2 + $0xb1] sm:$0xff]  ;;  %313 = vst.msk [vmem:[#allocation2 + $0x121] sm:$0xff] %vm170_vm0, %v2308_v56  ;;  %v405_v56 = vld [vmem:[#allocation2 + $0x9a] sm:$0xff]  ;;  %v408_v59 = vld [vmem:[#allocation2 + $0xc2] sm:$0xff] }
  0x61   : > { %2429 = vrot.lane.b32.xlu0 %v3349_v57, %s3104_s24  ;;  %314 = vst.msk [vmem:[#allocation2 + $0x129] sm:$0xff] %vm170_vm0, %v2309_v58  ;;  %v378_v6 = vld [vmem:[#allocation2 + $0xd9] sm:$0xff]  ;;  %v3365_v9 = vpack.i.bf16 %v375_v2, %v374_v1  ;;  %v398_v44 = vld [vmem:[#allocation2 + $0x4a] sm:$0xff]  ;;  %v3427_v61 = vpack.i.bf16 %v405_v56, %v404_v55 }
  0x62   : > { %v379_v7 = vld [vmem:[#allocation2 + $0xe1] sm:$0xff]  ;;  %317 = vst.msk [vmem:[#allocation2 + $0x151] sm:$0xff] %vm170_vm0, %v2316_v62  ;;  %v3415_v50 = vpack.i.bf16 %v399_v46, %v398_v44  ;;  %v406_v53 = vld [vmem:[#allocation2 + $0xaa] sm:$0xff]  ;;  %v407_v54 = vld [vmem:[#allocation2 + $0xb2] sm:$0xff] }
  0x63   : > { %318 = vst.msk [vmem:[#allocation2 + $0x159] sm:$0xff] %vm170_vm0, %v2317_v63  ;;  %v3371_v11 = vpack.i.bf16 %v379_v7, %v378_v6  ;;  %v382_v12 = vld [vmem:[#allocation2 + $0x109] sm:$0xff]  ;;  %v3425_v58 = vpack.i.bf16 %v407_v54, %v406_v53  ;;  %v410_v1 = vld [vmem:[#allocation2 + $0xda] sm:$0xff] }
  0x64   : > { %315 = vst.msk [vmem:[#allocation2 + $0x139] sm:$0xff] %vm170_vm0, %v2312_v3  ;;  %v383_v13 = vld [vmem:[#allocation2 + $0x111] sm:$0xff]  ;;  %v411_v2 = vld [vmem:[#allocation2 + $0xe2] sm:$0xff] }
  0x65   : > { %2439 = vrot.lane.b32.xlu2 %v3361_v4, %s3104_s24  ;;  %316 = vst.msk [vmem:[#allocation2 + $0x141] sm:$0xff] %vm170_vm0, %v2313_v5  ;;  %v380_v14 = vld [vmem:[#allocation2 + $0xf1] sm:$0xff]  ;;  %v3380_v16 = vpack.i.bf16 %v383_v13, %v382_v12  ;;  %v3439_v7 = vpack.i.bf16 %v411_v2, %v410_v1  ;;  %v431_v44 = vld [vmem:[#allocation2 + $0x68] sm:$0xff]  ;;  %v433_v54 = vld [vmem:[#allocation2 + $0x80] sm:$0xff] }
  0x66   : > { %319 = vst.msk [vmem:[#allocation2 + $0x169] sm:$0xff] %vm170_vm0, %v2320_v8  ;;  %v381_v15 = vld [vmem:[#allocation2 + $0xf9] sm:$0xff]  ;;  %v409_v60 = vld [vmem:[#allocation2 + $0xca] sm:$0xff]  ;;  %v3489_v49 = vpack.i.bf16 %v431_v44, %v430_v43 }
  0x67   : > { %2434 = vrot.lane.b32.xlu1 %v3365_v9, %s3104_s24  ;;  %320 = vst.msk [vmem:[#allocation2 + $0x171] sm:$0xff] %vm170_vm0, %v2321_v10  ;;  %v384_v17 = vld [vmem:[#allocation2 + $0x121] sm:$0xff]  ;;  %v3382_v19 = vpack.i.bf16 %v381_v15, %v380_v14  ;;  %v3431_v62 = vpack.i.bf16 %v409_v60, %v408_v59  ;;  %v412_v63 = vld [vmem:[#allocation2 + $0xf2] sm:$0xff]  ;;  %v414_v5 = vld [vmem:[#allocation2 + $0x10a] sm:$0xff] }
  0x68   : > { %v385_v18 = vld [vmem:[#allocation2 + $0x129] sm:$0xff]  ;;  %4571 = vst [vmem:[#allocation6_spill] sm:$0xff] %v3425_v58  ;;  %v413_v0 = vld [vmem:[#allocation2 + $0xfa] sm:$0xff]  ;;  %v415_v6 = vld [vmem:[#allocation2 + $0x112] sm:$0xff] }
  0x69   : > { %2444 = vrot.lane.b32.xlu0 %v3371_v11, %s3104_s24  ;;  %v3386_v20 = vpack.i.bf16 %v385_v18, %v384_v17  ;;  %v388_v21 = vld [vmem:[#allocation2 + $0x151] sm:$0xff]  ;;  %v3437_v3 = vpack.i.bf16 %v413_v0, %v412_v63  ;;  %4573 = vst [vmem:[#allocation8_spill] sm:$0xff] %v3439_v7  ;;  %v3443_v8 = vpack.i.bf16 %v415_v6, %v414_v5  ;;  %v416_v13 = vld [vmem:[#allocation2 + $0x122] sm:$0xff] }
  0x6a   : > { %v389_v22 = vld [vmem:[#allocation2 + $0x159] sm:$0xff]  ;;  %v417_v14 = vld [vmem:[#allocation2 + $0x12a] sm:$0xff]  ;;  %4580 = vst [vmem:[#allocation15_spill] sm:$0xff] %v3489_v49 }
  0x6b   : > { %v386_v23 = vld [vmem:[#allocation2 + $0x139] sm:$0xff]  ;;  %v3392_v25 = vpack.i.bf16 %v389_v22, %v388_v21  ;;  %4572 = vst [vmem:[#allocation7_spill] sm:$0xff] %v3437_v3  ;;  %v3451_v21 = vpack.i.bf16 %v417_v14, %v416_v13  ;;  %v3467_v32 = vld [vmem:[#allocation2 + $0x30] sm:$0xff]  ;;  %v3482_v46 = vld [vmem:[#allocation2 + $0x48] sm:$0xff] }
  0x6c   : > { %v387_v24 = vld [vmem:[#allocation2 + $0x141] sm:$0xff]  ;;  %4574 = vst [vmem:[#allocation9_spill] sm:$0xff] %v3443_v8  ;;  %v420_v17 = vld [vmem:[#allocation2 + $0x152] sm:$0xff]  ;;  %v3477_v38 = vpack.i.bf16 %v3469_v34, %v3467_v32 }
  0x6d   : > { %2454 = vrot.lane.b32.xlu2 %v3380_v16, %s3104_s24  ;;  %v390_v26 = vld [vmem:[#allocation2 + $0x169] sm:$0xff]  ;;  %v3394_v29 = vpack.i.bf16 %v387_v24, %v386_v23  ;;  %v418_v10 = vld [vmem:[#allocation2 + $0x13a] sm:$0xff]  ;;  %4576 = vst [vmem:[#allocation11_spill] sm:$0xff] %v3451_v21 }
  0x6e   : > { %v391_v28 = vld [vmem:[#allocation2 + $0x171] sm:$0xff]  ;;  %v419_v12 = vld [vmem:[#allocation2 + $0x142] sm:$0xff]  ;;  %v421_v18 = vld [vmem:[#allocation2 + $0x15a] sm:$0xff]  ;;  %4579 = vst [vmem:[#allocation14_spill] sm:$0xff] %v3477_v38 }
  0x6f   : > { %2449 = vrot.lane.b32.xlu1 %v3382_v19, %s3104_s24  ;;  %v3398_v30 = vpack.i.bf16 %v391_v28, %v390_v26  ;;  %v3449_v15 = vpack.i.bf16 %v419_v12, %v418_v10  ;;  %v3455_v22 = vpack.i.bf16 %v421_v18, %v420_v17  ;;  %v3457_v23 = vld [vmem:[#allocation2 + $0x18] sm:$0xff]  ;;  %v3459_v24 = vld [vmem:[#allocation2 + $0x20] sm:$0xff]  ;;  %v422_v26 = vld [vmem:[#allocation2 + $0x16a] sm:$0xff] }
  0x70   : > { %v423_v28 = vld [vmem:[#allocation2 + $0x172] sm:$0xff]  ;;  %v2558_v31 = vpack.i.bf16 %v3459_v24, %v3457_v23  ;;  %v3499_v59 = vld [vmem:[#allocation2 + $0xa8] sm:$0xff]  ;;  %v438_v13 = vld [vmem:[#allocation2 + $0xc0] sm:$0xff] }
  0x71   : > { %2459 = vrot.lane.b32.xlu0 %v3386_v20, %s3104_s24  ;;  %4575 = vst [vmem:[#allocation10_spill] sm:$0xff] %v3449_v15  ;;  %v3471_v35 = vpack.i.bf16 %v423_v28, %v422_v26  ;;  %v2340_v37 = vld [vmem:[%s3279_s29 + $0x78] sm:$0xff]   ;;  %v3484_v48 = vld [vmem:[#allocation2 + $0x50] sm:$0xff]  ;;  %v439_v14 = vld [vmem:[#allocation2 + $0xc8] sm:$0xff]  ;;  %s4414_s29 = scalar_lea.vmem [#allocation3], %s2226_s28 }
  0x72   : > { %4577 = vst [vmem:[#allocation12_spill] sm:$0xff] %v3455_v22  ;;  %v2325_v42 = vunpack.c.h.bf16 %v2340_v37  ;;  %v432_v53 = vld [vmem:[#allocation2 + $0x78] sm:$0xff]  ;;  %v3493_v55 = vpack.i.bf16 %v3484_v48, %v3482_v46  ;;  %v3501_v60 = vld [vmem:[#allocation2 + $0xb0] sm:$0xff]  ;;  %v3527_v18 = vpack.i.bf16 %v439_v14, %v438_v13 }
  0x73   : > { %4578 = vst [vmem:[#allocation13_spill] sm:$0xff] %v3471_v35  ;;  %v3497_v56 = vpack.i.bf16 %v433_v54, %v432_v53  ;;  %v3505_v2 = vld [vmem:[#allocation2 + $0x90] sm:$0xff]  ;;  %v3507_v5 = vld [vmem:[#allocation2 + $0x98] sm:$0xff]  ;;  %v3513_v6 = vpack.i.bf16 %v3501_v60, %v3499_v59 }
  0x74   : > { %322 = vst.msk [vmem:[#allocation2 + $0x189] sm:$0xff] %vm170_vm0, %v2325_v42  ;;  %v3523_v17 = vpack.i.bf16 %v3507_v5, %v3505_v2  ;;  %v3529_v26 = vld [vmem:[#allocation2 + $0xf0] sm:$0xff]  ;;  %v3531_v28 = vld [vmem:[#allocation2 + $0xf8] sm:$0xff] }
  0x75   : > { %2469 = vrot.lane.b32.xlu2 %v3392_v25, %s3104_s24  ;;  %4581 = vst [vmem:[#allocation16_spill] sm:$0xff] %v3493_v55  ;;  %v3535_v42 = vld [vmem:[#allocation2 + $0xd8] sm:$0xff] }
  0x76   : > { %4582 = vst [vmem:[#allocation17_spill] sm:$0xff] %v3497_v56 }
  0x77   : > { %2464 = vrot.lane.b32.xlu1 %v3394_v29, %s3104_s24  ;;  %4583 = vst [vmem:[#allocation18_spill] sm:$0xff] %v3513_v6 }
  0x78   : > { %4584 = vst [vmem:[#allocation19_spill] sm:$0xff] %v3523_v17 }
  0x79   : > { %2474 = vrot.lane.b32.xlu0 %v3398_v30, %s3104_s24  ;;  %4585 = vst [vmem:[#allocation20_spill] sm:$0xff] %v3527_v18 }
  0x7d   : > { %2484 = vrot.lane.b32.xlu2 %v3404_v36, %s3105_s30 }
  0x7f   : > { %2479 = vrot.lane.b32.xlu1 %v2478_v40, %s3105_s30  ;;  %v2324_v40 = vunpack.c.l.bf16 %v2340_v37 }
  0x81   : > { %2489 = vrot.lane.b32.xlu0 %v3408_v41, %s3105_s30  ;;  %321 = vst.msk [vmem:[#allocation2 + $0x181] sm:$0xff] %vm170_vm0, %v2324_v40 }
  0x85   : > { %2499 = vrot.lane.b32.xlu2 %v3413_v47, %s3105_s30 }
  0x87   : > { %2494 = vrot.lane.b32.xlu1 %v3415_v50, %s3105_s30 }
  0x89   : > { %2504 = vrot.lane.b32.xlu0 %v3419_v52, %s3105_s30 }
  0x8d   : > { %2514 = vrot.lane.b32.xlu2 %v3425_v58, %s3105_s30 }
  0x8f   : > { %2509 = vrot.lane.b32.xlu1 %v3427_v61, %s3105_s30 }
  0x91   : > { %2519 = vrot.lane.b32.xlu0 %v3431_v62, %s3105_s30 }
  0x95   : > { %2529 = vrot.lane.b32.xlu2 %v3437_v3, %s3105_s30 }
  0x97   : > { %2524 = vrot.lane.b32.xlu1 %v3439_v7, %s3105_s30 }
  0x99   : > { %2534 = vrot.lane.b32.xlu0 %v3443_v8, %s3105_s30 }
  0x9d   : > { %2544 = vrot.lane.b32.xlu2 %v3449_v15, %s3105_s30  ;;  %v451_v15 = vld [vmem:[#allocation2 + $0x158] sm:$0xff] }
  0x9f   : > { %2539 = vrot.lane.b32.xlu1 %v3451_v21, %s3105_s30  ;;  %v455_v21 = vld [vmem:[#allocation2 + $0x188] sm:$0xff] }
  0xa1   : > { %2549 = vrot.lane.b32.xlu0 %v3455_v22, %s3105_s30 }
  0xa5   : > { %2559 = vrot.lane.b32.xlu2 %v2558_v31, %s3106_s4 }
  0xa7   : > { %2554 = vrot.lane.b32.xlu1 %v3471_v35, %s3105_s30  ;;  %s2261_s30 = sshll.u32 %s3156_s16, 7  ;;  %s2157_s16 = sshll.u32 %s4414_s29, 4  ;;  %s2158_s16 = int_to_ptr.vmem [resolvable:$true] %s2157_s16 }
  0xa9   : > { %2564 = vrot.lane.b32.xlu0 %v3477_v38, %s3106_s4 }
  0xad   : > { %2574 = vrot.lane.b32.xlu2 %v3489_v49, %s3106_s4  ;;  %v3559_v49 = vld [vmem:[#allocation2 + $0x140] sm:$0xff] }
  0xaf   : > { %2569 = vrot.lane.b32.xlu1 %v3493_v55, %s3106_s4  ;;  %v2420_v63 = vpop.permute.xlu2 %2419  ;;  %v3568_v55 = vpop.permute.xlu0 %2399 }
  0xb0   : > { %v2422_v0 = vunpack.i.h.bf16 %v2420_v63  ;;  %v2421_v1 = vunpack.i.l.bf16 %v2420_v63 }
  0xb1   : > { %2579 = vrot.lane.b32.xlu0 %v3497_v56, %s3106_s4  ;;  %v3565_v56 = vld [vmem:[#allocation2 + $0x128] sm:$0xff] }
  0xb2   : > { %v3516_v10 = vsel %vm170_vm0, %v430_v43, %v2421_v1  ;;  %v3519_v12 = vsel %vm170_vm0, %v431_v44, %v2422_v0  ;;  %v3537_v43 = vld [vmem:[#allocation2 + $0xe0] sm:$0xff]  ;;  %v3543_v44 = vpack.i.bf16 %v3531_v28, %v3529_v26  ;;  %v444_v1 = vld [vmem:[#allocation2 + $0x108] sm:$0xff]  ;;  %4589 = vst [vmem:[#allocation24_spill] sm:$0xff] %v3565_v56 }
  0xb4   : > { %4586 = vst [vmem:[#allocation21_spill] sm:$0xff] %v3543_v44 }
  0xb5   : > { %2589 = vrot.lane.b32.xlu2 %v3513_v6, %s3106_s4  ;;  %v445_v6 = vld [vmem:[#allocation2 + $0x110] sm:$0xff] }
  0xb7   : > { %2584 = vrot.lane.b32.xlu1 %v3523_v17, %s3106_s4  ;;  %v2425_v31 = vpop.permute.xlu2 %2424  ;;  %v3557_v17 = vld [vmem:[#allocation2 + $0x138] sm:$0xff] }
  0xb8   : > { %v2427_v37 = vunpack.i.h.bf16 %v2425_v31  ;;  %v2426_v40 = vunpack.i.l.bf16 %v2425_v31  ;;  %v3553_v31 = vpack.i.bf16 %v3537_v43, %v3535_v42 }
  0xb9   : > { %2594 = vrot.lane.b32.xlu0 %v3527_v18, %s3106_s4  ;;  %v2608_v18 = vpack.i.bf16 %v445_v6, %v444_v1 }
  0xba   : > { %v3546_v63 = vsel %vm170_vm0, %v433_v54, %v2427_v37  ;;  %v3549_v0 = vsel %vm170_vm0, %v432_v53, %v2426_v40  ;;  %4587 = vst [vmem:[#allocation22_spill] sm:$0xff] %v3553_v31  ;;  %v3563_v40 = vld [vmem:[#allocation2 + $0x120] sm:$0xff] }
  0xbb   : > { %4588 = vst [vmem:[#allocation23_spill] sm:$0xff] %v3563_v40 }
  0xbd   : > { %2604 = vrot.lane.b32.xlu2 %v3543_v44, %s3106_s4  ;;  %v2618_v44 = vpack.i.bf16 %v3559_v49, %v3557_v17 }
  0xbf   : > { %2599 = vrot.lane.b32.xlu1 %v3553_v31, %s3106_s4  ;;  %v2440_v54 = vpop.permute.xlu2 %2439  ;;  %v450_v31 = vld [vmem:[#allocation2 + $0x150] sm:$0xff] }
  0xc0   : > { %v2442_v53 = vunpack.i.h.bf16 %v2440_v54  ;;  %v2441_v37 = vunpack.i.l.bf16 %v2440_v54  ;;  %v2613_v54 = vpack.i.bf16 %v3565_v56, %v3563_v40  ;;  %v3581_v22 = vpack.i.bf16 %v451_v15, %v450_v31 }
  0xc1   : > { %2609 = vrot.lane.b32.xlu0 %v2608_v18, %s3106_s4  ;;  %v454_v18 = vld [vmem:[#allocation2 + $0x180] sm:$0xff] }
  0xc2   : > { %v3573_v38 = vsel %vm170_vm0, %v439_v14, %v2442_v53  ;;  %v3576_v35 = vsel %vm170_vm0, %v438_v13, %v2441_v37  ;;  %4590 = vst [vmem:[#allocation25_spill] sm:$0xff] %v3581_v22  ;;  %v3584_v53 = vld [vmem:[#allocation2 + $0x168] sm:$0xff]  ;;  %v3586_v13 = vld [vmem:[#allocation2 + $0x170] sm:$0xff]  ;;  %v2633_v40 = vpack.i.bf16 %v455_v21, %v454_v18 }
  0xc5   : > { %2619 = vrot.lane.b32.xlu2 %v2618_v44, %s3106_s4 }
  0xc7   : > { %2614 = vrot.lane.b32.xlu1 %v2613_v54, %s3106_s4  ;;  %v2455_v3 = vpop.permute.xlu2 %2454 }
  0xc8   : > { %v2457_v8 = vunpack.i.h.bf16 %v2455_v3  ;;  %v2456_v14 = vunpack.i.l.bf16 %v2455_v3  ;;  %v3600_v3 = vpack.i.bf16 %v3586_v13, %v3584_v53 }
  0xc9   : > { %2624 = vrot.lane.b32.xlu0 %v3581_v22, %s3106_s4  ;;  %v3590_v37 = vpop.permute.xlu1 %2409 }
  0xca   : > { %v3593_v44 = vsel %vm170_vm0, %v445_v6, %v2457_v8  ;;  %v3596_v56 = vsel %vm170_vm0, %v444_v1, %v2456_v14 }
  0xcb   : > { %v2405_v54 = vpop.permute.xlu0 %2404 }
  0xcc   : > { %v2406_v18 = vunpack.i.l.bf16 %v2405_v54 }
  0xcd   : > { %2634 = vrot.lane.b32.xlu2 %v2633_v40, %s3106_s4  ;;  %v2407_v40 = vunpack.i.h.bf16 %v2405_v54 }
  0xcf   : > { %2629 = vrot.lane.b32.xlu1 %v3600_v3, %s3106_s4  ;;  %v2470_v22 = vpop.permute.xlu2 %2469 }
  0xd0   : > { %v2472_v7 = vunpack.i.h.bf16 %v2470_v22  ;;  %v2471_v58 = vunpack.i.l.bf16 %v2470_v22 }
  0xd1   : > { %2639 = vrot.lane.b32.xlu0 %v3330_v39, %s3107_s5  ;;  %v3607_v8 = vpop.permute.xlu1 %2414 }
  0xd2   : > { %v3610_v21 = vsel %vm170_vm0, %v451_v15, %v2472_v7  ;;  %v3613_v6 = vsel %vm170_vm0, %v450_v31, %v2471_v58  ;;  %v1643_v7 = vsel %vm170_vm0, %v3457_v23, %v2406_v18  ;;  %v1644_v58 = vsel %vm170_vm0, %v3459_v24, %v2407_v40 }
  0xd3   : > { %v3615_v1 = vpop.permute.xlu0 %2429 }
  0xd5   : > { %2649 = vrot.lane.b32.xlu2 %v3342_v51, %s3107_s5 }
  0xd7   : > { %2644 = vrot.lane.b32.xlu1 %v3323_v33, %s3107_s5  ;;  %v2485_v39 = vpop.permute.xlu2 %2484 }
  0xd8   : > { %v2487_v22 = vunpack.i.h.bf16 %v2485_v39  ;;  %v2486_v14 = vunpack.i.l.bf16 %v2485_v39 }
  0xd9   : > { %2654 = vrot.lane.b32.xlu0 %v3316_v27, %s3107_s5  ;;  %v2435_v15 = vpop.permute.xlu1 %2434 }
  0xda   : > { %v3628_v31 = vsel %vm1673_vm2, %v1643_v7, %v2486_v14  ;;  %v3631_v51 = vsel %vm1673_vm2, %v1644_v58, %v2487_v22  ;;  %v2436_v22 = vunpack.i.l.bf16 %v2435_v15 }
  0xdb   : > { %v3633_v33 = vpop.permute.xlu0 %2444 }
  0xdd   : > { %2664 = vrot.lane.b32.xlu2 %v3349_v57, %s3107_s5  ;;  %v2437_v57 = vunpack.i.h.bf16 %v2435_v15 }
  0xdf   : > { %2659 = vrot.lane.b32.xlu1 %v3337_v45, %s3107_s5  ;;  %v2500_v23 = vpop.permute.xlu2 %2499 }
  0xe0   : > { %v2502_v24 = vunpack.i.h.bf16 %v2500_v23  ;;  %v2501_v54 = vunpack.i.l.bf16 %v2500_v23 }
  0xe1   : > { %2669 = vrot.lane.b32.xlu0 %v3365_v9, %s3107_s5  ;;  %v2450_v27 = vpop.permute.xlu1 %2449 }
  0xe2   : > { %v3643_v40 = vsel %vm1673_vm2, %v3519_v12, %v2502_v24  ;;  %v3647_v18 = vsel %vm1673_vm2, %v3516_v10, %v2501_v54  ;;  %v1656_v12 = vsel %vm170_vm0, %v3501_v60, %v2437_v57  ;;  %v1655_v10 = vsel %vm170_vm0, %v3499_v59, %v2436_v22 }
  0xe3   : > { %v3649_v39 = vpop.permute.xlu0 %2459  ;;  %v2452_v24 = vunpack.i.h.bf16 %v2450_v27  ;;  %v2451_v54 = vunpack.i.l.bf16 %v2450_v27  ;;  %v2402_v60 = vunpack.i.h.bf16 %v3568_v55  ;;  %v2401_v57 = vunpack.i.l.bf16 %v3568_v55 }
  0xe4   : > { %v2411_v22 = vunpack.i.l.bf16 %v3590_v37 }
  0xe5   : > { %2679 = vrot.lane.b32.xlu2 %v3371_v11, %s3107_s5 }
  0xe7   : > { %2674 = vrot.lane.b32.xlu1 %v3361_v4, %s3107_s5  ;;  %v2515_v45 = vpop.permute.xlu2 %2514 }
  0xe8   : > { %v2517_v9 = vunpack.i.h.bf16 %v2515_v45  ;;  %v2516_v14 = vunpack.i.l.bf16 %v2515_v45  ;;  %v329_v45 = vld [vmem:[#allocation2 + $0x8] sm:$0xff] }
  0xe9   : > { %2684 = vrot.lane.b32.xlu0 %v3382_v19, %s3107_s5  ;;  %v2465_v7 = vpop.permute.xlu1 %2464 }
  0xea   : > { %v3662_v58 = vsel %vm1673_vm2, %v1656_v12, %v2517_v9  ;;  %v3665_v11 = vsel %vm1673_vm2, %v1655_v10, %v2516_v14  ;;  %v1661_v12 = vsel %vm170_vm0, %v3529_v26, %v2451_v54  ;;  %v1645_v26 = vsel %vm170_vm0, %v3467_v32, %v2411_v22 }
  0xeb   : > { %v2475_v4 = vpop.permute.xlu0 %2474  ;;  %v2417_v22 = vunpack.i.h.bf16 %v3607_v8 }
  0xec   : > { %v2477_v15 = vunpack.i.h.bf16 %v2475_v4  ;;  %v2476_v23 = vunpack.i.l.bf16 %v2475_v4 }
  0xed   : > { %2694 = vrot.lane.b32.xlu2 %v3386_v20, %s3107_s5  ;;  %v328_v20 = vld [vmem:[#allocation2] sm:$0xff] }
  0xee   : > { %v3671_v59 = vsel %vm170_vm0, %v3586_v13, %v2477_v15  ;;  %v3675_v19 = vsel %vm170_vm0, %v3584_v53, %v2476_v23  ;;  %v2412_v13 = vunpack.i.h.bf16 %v3590_v37  ;;  %v1662_v53 = vsel %vm170_vm0, %v3531_v28, %v2452_v24  ;;  %v486_v23 = vld [vmem:[#allocation2 + $0x181] sm:$0xff]  ;;  %v487_v37 = vld [vmem:[#allocation2 + $0x189] sm:$0xff] }
  0xef   : > { %2689 = vrot.lane.b32.xlu1 %v3380_v16, %s3107_s5  ;;  %v2530_v27 = vpop.permute.xlu2 %2529  ;;  %v1641_v28 = vsel %vm170_vm0, %v328_v20, %v2401_v57 }
  0xf0   : > { %v2532_v9 = vunpack.i.h.bf16 %v2530_v27  ;;  %v2531_v14 = vunpack.i.l.bf16 %v2530_v27  ;;  %v1642_v27 = vsel %vm170_vm0, %v329_v45, %v2402_v60  ;;  %v3705_v60 = vpack.i.bf16 %v487_v37, %v486_v23 }
  0xf1   : > { %2699 = vrot.lane.b32.xlu0 %v3394_v29, %s3107_s5  ;;  %v2480_v55 = vpop.permute.xlu1 %2479  ;;  %v2416_v45 = vunpack.i.l.bf16 %v3607_v8  ;;  %v1648_v37 = vsel %vm170_vm0, %v3484_v48, %v2417_v22 }
  0xf2   : > { %v2482_v10 = vunpack.i.h.bf16 %v2480_v55  ;;  %v2481_v4 = vunpack.i.l.bf16 %v2480_v55  ;;  %v3690_v16 = vsel %vm1673_vm2, %v1662_v53, %v2532_v9  ;;  %v3693_v15 = vsel %vm1673_vm2, %v1661_v12, %v2531_v14 }
  0xf3   : > { %v2490_v24 = vpop.permute.xlu0 %2489  ;;  %v1646_v14 = vsel %vm170_vm0, %v3469_v34, %v2412_v13  ;;  %v2467_v53 = vunpack.i.h.bf16 %v2465_v7  ;;  %v2466_v12 = vunpack.i.l.bf16 %v2465_v7 }
  0xf4   : > { %v1675_v29 = vsel %vm1673_vm2, %v1642_v27, %v2482_v10  ;;  %v1674_v54 = vsel %vm1673_vm2, %v1641_v28, %v2481_v4  ;;  %v2492_v55 = vunpack.i.h.bf16 %v2490_v24  ;;  %v2491_v9 = vunpack.i.l.bf16 %v2490_v24 }
  0xf5   : > { %2709 = vrot.lane.b32.xlu2 %v3398_v30, %s3107_s5  ;;  %v1668_v30 = vsel %vm170_vm0, %v3559_v49, %v2467_v53  ;;  %v1667_v13 = vsel %vm170_vm0, %v3557_v17, %v2466_v12  ;;  %v1647_v49 = vsel %vm170_vm0, %v3482_v46, %v2416_v45  ;;  %v2432_v46 = vunpack.i.h.bf16 %v3615_v1 }
  0xf6   : > { %v3708_v57 = vsel %vm1673_vm2, %v1646_v14, %v2492_v55  ;;  %v3711_v32 = vsel %vm1673_vm2, %v1645_v26, %v2491_v9  ;;  %v2431_v9 = vunpack.i.l.bf16 %v3615_v1 }
  0xf7   : > { %2704 = vrot.lane.b32.xlu1 %v3392_v25, %s3107_s5  ;;  %v2545_v34 = vpop.permute.xlu2 %2544  ;;  %v1654_v1 = vsel %vm170_vm0, %v3507_v5, %v2432_v46  ;;  %v4591_v46 = vld [vmem:[#allocation6_spill] sm:$0xff] }
  0xf8   : > { %v2547_v7 = vunpack.i.h.bf16 %v2545_v34  ;;  %v2546_v20 = vunpack.i.l.bf16 %v2545_v34 }
  0xf9   : > { %2714 = vrot.lane.b32.xlu0 %v3705_v60, %s3107_s5  ;;  %v2495_v10 = vpop.permute.xlu1 %2494 }
  0xfa   : > { %v2497_v4 = vunpack.i.h.bf16 %v2495_v10  ;;  %v2496_v23 = vunpack.i.l.bf16 %v2495_v10  ;;  %v3724_v8 = vsel %vm1673_vm2, %v1668_v30, %v2547_v7  ;;  %v3727_v25 = vsel %vm1673_vm2, %v1667_v13, %v2546_v20 }
  0xfb   : > { %v2505_v27 = vpop.permute.xlu0 %2504 }
  0xfc   : > { %v1680_v17 = vsel %vm1673_vm2, %v1647_v49, %v2496_v23  ;;  %v1681_v28 = vsel %vm1673_vm2, %v1648_v37, %v2497_v4  ;;  %v2507_v26 = vunpack.i.h.bf16 %v2505_v27  ;;  %v2506_v24 = vunpack.i.l.bf16 %v2505_v27 }
  0xfd   : > { %2724 = vrot.lane.b32.xlu2 %v3408_v41, %s3108_s6 }
  0xfe   : > { %v3739_v55 = vsel %vm1673_vm2, %v3546_v63, %v2507_v26  ;;  %v3743_v48 = vsel %vm1673_vm2, %v3549_v0, %v2506_v24 }
  0xff   : > { %2719 = vrot.lane.b32.xlu1 %v3404_v36, %s3108_s6  ;;  %v2560_v14 = vpop.permute.xlu2 %2559  ;;  %v1653_v36 = vsel %vm170_vm0, %v3505_v2, %v2431_v9  ;;  %v2447_v2 = vunpack.i.h.bf16 %v3633_v33 }
 0x100   : > { %v2562_v53 = vunpack.i.h.bf16 %v2560_v14  ;;  %v2561_v12 = vunpack.i.l.bf16 %v2560_v14 }
 0x101   : > { %2729 = vrot.lane.b32.xlu0 %v3415_v50, %s3108_s6  ;;  %v2510_v41 = vpop.permute.xlu1 %2509 }
 0x102   : > { %v2512_v63 = vunpack.i.h.bf16 %v2510_v41  ;;  %v2511_v22 = vunpack.i.l.bf16 %v2510_v41  ;;  %v3752_v0 = vsel %vm1706_vm3, %v1675_v29, %v2562_v53  ;;  %v3755_v45 = vsel %vm1706_vm3, %v1674_v54, %v2561_v12 }
 0x103   : > { %v2520_v34 = vpop.permute.xlu0 %2519  ;;  %v2446_v54 = vunpack.i.l.bf16 %v3633_v33  ;;  %v1660_v33 = vsel %vm170_vm0, %v3537_v43, %v2447_v2 }
 0x104   : > { %v1686_v7 = vsel %vm1673_vm2, %v1653_v36, %v2511_v22  ;;  %v1687_v50 = vsel %vm1673_vm2, %v1654_v1, %v2512_v63  ;;  %v2522_v20 = vunpack.i.h.bf16 %v2520_v34  ;;  %v2521_v30 = vunpack.i.l.bf16 %v2520_v34  ;;  %v4593_v22 = vld [vmem:[#allocation24_spill] sm:$0xff]  ;;  %v4594_v1 = vld [vmem:[#allocation23_spill] sm:$0xff] }
 0x105   : > { %2739 = vrot.lane.b32.xlu2 %v3419_v52, %s3108_s6 }
 0x106   : > { %v3767_v29 = vsel %vm1673_vm2, %v3573_v38, %v2522_v20  ;;  %v3771_v5 = vsel %vm1673_vm2, %v3576_v35, %v2521_v30 }
 0x107   : > { %2734 = vrot.lane.b32.xlu1 %v3413_v47, %s3108_s6  ;;  %v2575_v13 = vpop.permute.xlu2 %2574  ;;  %v1659_v47 = vsel %vm170_vm0, %v3535_v42, %v2446_v54  ;;  %v2462_v42 = vunpack.i.h.bf16 %v3649_v39 }
 0x108   : > { %v2577_v10 = vunpack.i.h.bf16 %v2575_v13  ;;  %v2576_v4 = vunpack.i.l.bf16 %v2575_v13  ;;  %v4595_v13 = vld [vmem:[#allocation9_spill] sm:$0xff] }
 0x109   : > { %2744 = vrot.lane.b32.xlu0 %v3427_v61, %s3108_s6  ;;  %v2525_v52 = vpop.permute.xlu1 %2524 }
 0x10a   : > { %v2527_v38 = vunpack.i.h.bf16 %v2525_v52  ;;  %v2526_v23 = vunpack.i.l.bf16 %v2525_v52  ;;  %v3780_v37 = vsel %vm1706_vm3, %v1681_v28, %v2577_v10  ;;  %v3783_v35 = vsel %vm1706_vm3, %v1680_v17, %v2576_v4  ;;  %v4596_v10 = vld [vmem:[#allocation7_spill] sm:$0xff] }
 0x10b   : > { %v2535_v49 = vpop.permute.xlu0 %2534  ;;  %v2461_v28 = vunpack.i.l.bf16 %v3649_v39  ;;  %v1666_v39 = vsel %vm170_vm0, %v4593_v22, %v2462_v42 }
 0x10c   : > { %v1692_v27 = vsel %vm1673_vm2, %v1659_v47, %v2526_v23  ;;  %v1693_v61 = vsel %vm1673_vm2, %v1660_v33, %v2527_v38  ;;  %v2537_v26 = vunpack.i.h.bf16 %v2535_v49  ;;  %v2536_v24 = vunpack.i.l.bf16 %v2535_v49  ;;  %v4597_v23 = vld [vmem:[#allocation11_spill] sm:$0xff] }
 0x10d   : > { %2754 = vrot.lane.b32.xlu2 %v3431_v62, %s3108_s6  ;;  %v4592_v62 = vld [vmem:[#allocation8_spill] sm:$0xff]  ;;  %v1665_v36 = vsel %vm170_vm0, %v4594_v1, %v2461_v28 }
 0x10e   : > { %v3795_v17 = vsel %vm1673_vm2, %v3593_v44, %v2537_v26  ;;  %v3799_v43 = vsel %vm1673_vm2, %v3596_v56, %v2536_v24 }
 0x10f   : > { %2749 = vrot.lane.b32.xlu1 %v4591_v46, %s3108_s6  ;;  %v2590_v9 = vpop.permute.xlu2 %2589 }
 0x110   : > { %v2592_v14 = vunpack.i.h.bf16 %v2590_v9  ;;  %v2591_v53 = vunpack.i.l.bf16 %v2590_v9  ;;  %v4598_v9 = vld [vmem:[#allocation12_spill] sm:$0xff] }
 0x111   : > { %2759 = vrot.lane.b32.xlu0 %v4592_v62, %s3108_s6  ;;  %v2540_v12 = vpop.permute.xlu1 %2539 }
 0x112   : > { %v2542_v44 = vunpack.i.h.bf16 %v2540_v12  ;;  %v2541_v41 = vunpack.i.l.bf16 %v2540_v12  ;;  %v3808_v63 = vsel %vm1706_vm3, %v1686_v7, %v2591_v53  ;;  %v3811_v56 = vsel %vm1706_vm3, %v1687_v50, %v2592_v14  ;;  %v519_v12 = vld [vmem:[#allocation2 + $0x18a] sm:$0xff] }
 0x113   : > { %v2550_v34 = vpop.permute.xlu0 %2549 }
 0x114   : > { %v1698_v20 = vsel %vm1673_vm2, %v1665_v36, %v2541_v41  ;;  %v1699_v30 = vsel %vm1673_vm2, %v1666_v39, %v2542_v44  ;;  %v2552_v2 = vunpack.i.h.bf16 %v2550_v34  ;;  %v2551_v54 = vunpack.i.l.bf16 %v2550_v34  ;;  %v4600_v44 = vld [vmem:[#allocation13_spill] sm:$0xff] }
 0x115   : > { %2769 = vrot.lane.b32.xlu2 %v4595_v13, %s3108_s6 }
 0x116   : > { %v3823_v7 = vsel %vm1673_vm2, %v3610_v21, %v2552_v2  ;;  %v3827_v50 = vsel %vm1673_vm2, %v3613_v6, %v2551_v54 }
 0x117   : > { %2764 = vrot.lane.b32.xlu1 %v4596_v10, %s3108_s6  ;;  %v2605_v4 = vpop.permute.xlu2 %2604  ;;  %v4601_v10 = vld [vmem:[#allocation14_spill] sm:$0xff] }
 0x118   : > { %v2607_v52 = vunpack.i.h.bf16 %v2605_v4  ;;  %v2606_v38 = vunpack.i.l.bf16 %v2605_v4 }
 0x119   : > { %2774 = vrot.lane.b32.xlu0 %v4597_v23, %s3108_s6  ;;  %v2555_v33 = vpop.permute.xlu1 %2554 }
 0x11a   : > { %v2557_v47 = vunpack.i.h.bf16 %v2555_v33  ;;  %v2556_v49 = vunpack.i.l.bf16 %v2555_v33  ;;  %v3834_v26 = vsel %vm1706_vm3, %v1692_v27, %v2606_v38  ;;  %v3837_v21 = vsel %vm1706_vm3, %v1693_v61, %v2607_v52  ;;  %v4599_v61 = vld [vmem:[#allocation10_spill] sm:$0xff]  ;;  %v4602_v52 = vld [vmem:[#allocation16_spill] sm:$0xff] }
 0x11b   : > { %v2565_v6 = vpop.permute.xlu0 %2564 }
 0x11c   : > { %v1704_v24 = vsel %vm1673_vm2, %v3675_v19, %v2556_v49  ;;  %v1705_v42 = vsel %vm1673_vm2, %v3671_v59, %v2557_v47  ;;  %v2567_v28 = vunpack.i.h.bf16 %v2565_v6  ;;  %v2566_v46 = vunpack.i.l.bf16 %v2565_v6  ;;  %v518_v59 = vld [vmem:[#allocation2 + $0x182] sm:$0xff] }
 0x11d   : > { %2784 = vrot.lane.b32.xlu2 %v4598_v9, %s3108_s6  ;;  %v3863_v36 = vpack.i.bf16 %v519_v12, %v518_v59  ;;  %v4603_v9 = vld [vmem:[#allocation17_spill] sm:$0xff] }
 0x11e   : > { %v3847_v14 = vsel %vm1706_vm3, %v3628_v31, %v2566_v46  ;;  %v3851_v27 = vsel %vm1706_vm3, %v3631_v51, %v2567_v28 }
 0x11f   : > { %2779 = vrot.lane.b32.xlu1 %v4599_v61, %s3108_s6  ;;  %v2620_v19 = vpop.permute.xlu2 %2619 }
 0x120   : > { %v2622_v53 = vunpack.i.h.bf16 %v2620_v19  ;;  %v2621_v62 = vunpack.i.l.bf16 %v2620_v19 }
 0x121   : > { %2789 = vrot.lane.b32.xlu0 %v4600_v44, %s3108_s6  ;;  %v2570_v41 = vpop.permute.xlu1 %2569 }
 0x122   : > { %v2572_v22 = vunpack.i.h.bf16 %v2570_v41  ;;  %v2571_v39 = vunpack.i.l.bf16 %v2570_v41  ;;  %v3858_v31 = vsel %vm1706_vm3, %v1698_v20, %v2621_v62  ;;  %v3861_v51 = vsel %vm1706_vm3, %v1699_v30, %v2622_v53  ;;  %v4605_v53 = vld [vmem:[#allocation19_spill] sm:$0xff] }
 0x123   : > { %v2580_v1 = vpop.permute.xlu0 %2579 }
 0x124   : > { %v1711_v34 = vsel %vm1706_vm3, %v3711_v32, %v2571_v39  ;;  %v1712_v2 = vsel %vm1706_vm3, %v3708_v57, %v2572_v22  ;;  %v2582_v54 = vunpack.i.h.bf16 %v2580_v1  ;;  %v2581_v13 = vunpack.i.l.bf16 %v2580_v1 }
 0x125   : > { %2799 = vrot.lane.b32.xlu2 %v4601_v10, %s3109_s7 }
 0x126   : > { %v3873_v20 = vsel %vm1706_vm3, %v3643_v40, %v2582_v54  ;;  %v3877_v30 = vsel %vm1706_vm3, %v3647_v18, %v2581_v13  ;;  %v4606_v54 = vld [vmem:[#allocation20_spill] sm:$0xff] }
 0x127   : > { %2794 = vrot.lane.b32.xlu1 %v3863_v36, %s3108_s6  ;;  %v2635_v32 = vpop.permute.xlu2 %2634  ;;  %s2156_s6 = scalar_lea.hbm %s4548_s3, %s2261_s30 }
 0x128   : > { %v2637_v4 = vunpack.i.h.bf16 %v2635_v32  ;;  %v2636_v57 = vunpack.i.l.bf16 %v2635_v32 }
 0x129   : > { %2804 = vrot.lane.b32.xlu0 %v4602_v52, %s3109_s7  ;;  %v2585_v38 = vpop.permute.xlu1 %2584 }
 0x12a   : > { %v2587_v23 = vunpack.i.h.bf16 %v2585_v38  ;;  %v2586_v33 = vunpack.i.l.bf16 %v2585_v38  ;;  %v3884_v47 = vsel %vm1706_vm3, %v1704_v24, %v2636_v57  ;;  %v3887_v40 = vsel %vm1706_vm3, %v1705_v42, %v2637_v4  ;;  %v4604_v42 = vld [vmem:[#allocation15_spill] sm:$0xff] }
 0x12b   : > { %v2595_v18 = vpop.permute.xlu0 %2594 }
 0x12c   : > { %v1717_v49 = vsel %vm1706_vm3, %v3743_v48, %v2586_v33  ;;  %v1718_v6 = vsel %vm1706_vm3, %v3739_v55, %v2587_v23  ;;  %v2597_v28 = vunpack.i.h.bf16 %v2595_v18  ;;  %v2596_v46 = vunpack.i.l.bf16 %v2595_v18  ;;  %v570_v23 = vld [vmem:[#allocation2 + $0xf9] sm:$0xff] }
 0x12d   : > { %2814 = vrot.lane.b32.xlu2 %v4603_v9, %s3109_s7 }
 0x12e   : > { %v3897_v61 = vsel %vm1706_vm3, %v3662_v58, %v2597_v28  ;;  %v3901_v24 = vsel %vm1706_vm3, %v3665_v11, %v2596_v46 }
 0x12f   : > { %2809 = vrot.lane.b32.xlu1 %v4604_v42, %s3109_s7  ;;  %v2650_v48 = vpop.permute.xlu2 %2649  ;;  %v4609_v42 = vld [vmem:[#allocation25_spill] sm:$0xff] }
 0x130   : > { %v2652_v19 = vunpack.i.h.bf16 %v2650_v48  ;;  %v2651_v55 = vunpack.i.l.bf16 %v2650_v48 }
 0x131   : > { %2819 = vrot.lane.b32.xlu0 %v4605_v53, %s3109_s7  ;;  %v2600_v62 = vpop.permute.xlu1 %2599 }
 0x132   : > { %v2602_v59 = vunpack.i.h.bf16 %v2600_v62  ;;  %v2601_v12 = vunpack.i.l.bf16 %v2600_v62  ;;  %v3908_v58 = vsel %vm1739_vm4, %v1711_v34, %v2651_v55  ;;  %v3911_v44 = vsel %vm1739_vm4, %v1712_v2, %v2652_v19  ;;  %v4607_v2 = vld [vmem:[#allocation18_spill] sm:$0xff]  ;;  %v602_v55 = vld [vmem:[#allocation2 + $0xfa] sm:$0xff] }
 0x133   : > { %v2610_v11 = vpop.permute.xlu0 %2609  ;;  %v601_v19 = vld [vmem:[#allocation2 + $0xf2] sm:$0xff] }
 0x134   : > { %v1723_v41 = vsel %vm1706_vm3, %v3771_v5, %v2601_v12  ;;  %v1724_v22 = vsel %vm1706_vm3, %v3767_v29, %v2602_v59  ;;  %v2612_v39 = vunpack.i.h.bf16 %v2610_v11  ;;  %v2611_v1 = vunpack.i.l.bf16 %v2610_v11  ;;  %v4608_v29 = vld [vmem:[#allocation22_spill] sm:$0xff]  ;;  %v578_v12 = vld [vmem:[#allocation2 + $0x159] sm:$0xff] }
 0x135   : > { %2829 = vrot.lane.b32.xlu2 %v4606_v54, %s3109_s7  ;;  %v577_v59 = vld [vmem:[#allocation2 + $0x151] sm:$0xff] }
 0x136   : > { %v3921_v13 = vsel %vm1706_vm3, %v3690_v16, %v2612_v39  ;;  %v3925_v34 = vsel %vm1706_vm3, %v3693_v15, %v2611_v1  ;;  %v569_v15 = vld [vmem:[#allocation2 + $0xf1] sm:$0xff] }
 0x137   : > { %2824 = vrot.lane.b32.xlu1 %v4607_v2, %s3109_s7  ;;  %v2665_v5 = vpop.permute.xlu2 %2664  ;;  %v2848_v48 = vpack.i.bf16 %v570_v23, %v569_v15  ;;  %v609_v2 = vld [vmem:[#allocation2 + $0x152] sm:$0xff] }
 0x138   : > { %v2667_v10 = vunpack.i.h.bf16 %v2665_v5  ;;  %v2666_v32 = vunpack.i.l.bf16 %v2665_v5  ;;  %v610_v5 = vld [vmem:[#allocation2 + $0x15a] sm:$0xff]  ;;  %v561_v23 = vld [vmem:[#allocation2 + $0x91] sm:$0xff] }
 0x139   : > { %2834 = vrot.lane.b32.xlu0 %v4608_v29, %s3109_s7  ;;  %v2615_v4 = vpop.permute.xlu1 %2614 }
 0x13a   : > { %v2617_v57 = vunpack.i.h.bf16 %v2615_v4  ;;  %v2616_v52 = vunpack.i.l.bf16 %v2615_v4  ;;  %v3932_v38 = vsel %vm1739_vm4, %v1717_v49, %v2666_v32  ;;  %v3935_v16 = vsel %vm1739_vm4, %v1718_v6, %v2667_v10 }
 0x13b   : > { %v2625_v33 = vpop.permute.xlu0 %2624  ;;  %v2853_v32 = vpack.i.bf16 %v578_v12, %v577_v59 }
 0x13c   : > { %v1729_v18 = vsel %vm1706_vm3, %v3799_v43, %v2616_v52  ;;  %v1730_v28 = vsel %vm1706_vm3, %v3795_v17, %v2617_v57  ;;  %v2627_v46 = vunpack.i.h.bf16 %v2625_v33  ;;  %v2626_v9 = vunpack.i.l.bf16 %v2625_v33  ;;  %v4610_v43 = vld [vmem:[#allocation21_spill] sm:$0xff]  ;;  %v562_v33 = vld [vmem:[#allocation2 + $0x99] sm:$0xff] }
 0x13d   : > { %2844 = vrot.lane.b32.xlu2 %v4609_v42, %s3109_s7  ;;  %v554_v42 = vld [vmem:[#allocation2 + $0x39] sm:$0xff] }
 0x13e   : > { %v3945_v49 = vsel %vm1706_vm3, %v3724_v8, %v2627_v46  ;;  %v3949_v6 = vsel %vm1706_vm3, %v3727_v25, %v2626_v9  ;;  %v2858_v8 = vpack.i.bf16 %v602_v55, %v601_v19  ;;  %v553_v9 = vld [vmem:[#allocation2 + $0x31] sm:$0xff]  ;;  %v2873_v19 = vpack.i.bf16 %v562_v33, %v561_v23 }
 0x13f   : > { %2839 = vrot.lane.b32.xlu1 %v4610_v43, %s3109_s7  ;;  %v2680_v17 = vpop.permute.xlu2 %2679  ;;  %v2868_v59 = vpack.i.bf16 %v554_v42, %v553_v9 }
 0x140   : > { %v2682_v53 = vunpack.i.h.bf16 %v2680_v17  ;;  %v2681_v62 = vunpack.i.l.bf16 %v2680_v17  ;;  %v585_v17 = vld [vmem:[#allocation2 + $0x32] sm:$0xff] }
 0x141   : > { %2849 = vrot.lane.b32.xlu0 %v2848_v48, %s3110_s8  ;;  %v2630_v11 = vpop.permute.xlu1 %2629 }
 0x142   : > { %v2632_v39 = vunpack.i.h.bf16 %v2630_v11  ;;  %v2631_v1 = vunpack.i.l.bf16 %v2630_v11  ;;  %v3955_v25 = vsel %vm1739_vm4, %v1723_v41, %v2681_v62  ;;  %v3958_v54 = vsel %vm1739_vm4, %v1724_v22, %v2682_v53  ;;  %v586_v53 = vld [vmem:[#allocation2 + $0x3a] sm:$0xff] }
 0x143   : > { %v2640_v10 = vpop.permute.xlu0 %2639  ;;  %v2863_v41 = vpack.i.bf16 %v610_v5, %v609_v2  ;;  %v539_v2 = vld [vmem:[#allocation2 + $0x108] sm:$0xff]  ;;  %v540_v5 = vld [vmem:[#allocation2 + $0x110] sm:$0xff] }
 0x144   : > { %v1735_v29 = vsel %vm1706_vm3, %v3827_v50, %v2631_v1  ;;  %v1736_v4 = vsel %vm1706_vm3, %v3823_v7, %v2632_v39  ;;  %v2642_v57 = vunpack.i.h.bf16 %v2640_v10  ;;  %v2641_v52 = vunpack.i.l.bf16 %v2640_v10 }
 0x145   : > { %2859 = vrot.lane.b32.xlu2 %v2858_v8, %s3111_s9  ;;  %v2878_v1 = vpack.i.bf16 %v586_v53, %v585_v17  ;;  %v571_v17 = vld [vmem:[#allocation2 + $0x109] sm:$0xff]  ;;  %v572_v53 = vld [vmem:[#allocation2 + $0x111] sm:$0xff] }
 0x146   : > { %v3967_v22 = vsel %vm1739_vm4, %v3752_v0, %v2642_v57  ;;  %v3971_v15 = vsel %vm1739_vm4, %v3755_v45, %v2641_v52  ;;  %v594_v57 = vld [vmem:[#allocation2 + $0x9a] sm:$0xff] }
 0x147   : > { %2854 = vrot.lane.b32.xlu1 %v2853_v32, %s3110_s8  ;;  %v2695_v50 = vpop.permute.xlu2 %2694  ;;  %v593_v32 = vld [vmem:[#allocation2 + $0x92] sm:$0xff] }
 0x148   : > { %v2697_v7 = vunpack.i.h.bf16 %v2695_v50  ;;  %v2696_v46 = vunpack.i.l.bf16 %v2695_v50 }
 0x149   : > { %2864 = vrot.lane.b32.xlu0 %v2863_v41, %s3111_s9  ;;  %v2645_v48 = vpop.permute.xlu1 %2644  ;;  %v2888_v41 = vpack.i.bf16 %v540_v5, %v539_v2  ;;  %v604_v2 = vld [vmem:[#allocation2 + $0x112] sm:$0xff] }
 0x14a   : > { %v2647_v55 = vunpack.i.h.bf16 %v2645_v48  ;;  %v2646_v0 = vunpack.i.l.bf16 %v2645_v48  ;;  %v3976_v43 = vsel %vm1739_vm4, %v1729_v18, %v2696_v46  ;;  %v3979_v45 = vsel %vm1739_vm4, %v1730_v28, %v2697_v7 }
 0x14b   : > { %v2655_v62 = vpop.permute.xlu0 %2654  ;;  %v2883_v7 = vpack.i.bf16 %v594_v57, %v593_v32 }
 0x14c   : > { %v1742_v12 = vsel %vm1739_vm4, %v3847_v14, %v2646_v0  ;;  %v1743_v11 = vsel %vm1739_vm4, %v3851_v27, %v2647_v55  ;;  %v2657_v8 = vunpack.i.h.bf16 %v2655_v62  ;;  %v2656_v39 = vunpack.i.l.bf16 %v2655_v62  ;;  %v580_v55 = vld [vmem:[#allocation2 + $0x171] sm:$0xff] }
 0x14d   : > { %2874 = vrot.lane.b32.xlu2 %v2873_v19, %s3110_s8 }
 0x14e   : > { %v3988_v18 = vsel %vm1739_vm4, %v3780_v37, %v2657_v8  ;;  %v3992_v28 = vsel %vm1739_vm4, %v3783_v35, %v2656_v39 }
 0x14f   : > { %2869 = vrot.lane.b32.xlu1 %v2868_v59, %s3110_s8  ;;  %v2710_v14 = vpop.permute.xlu2 %2709 }
 0x150   : > { %v2712_v10 = vunpack.i.h.bf16 %v2710_v14  ;;  %v2711_v27 = vunpack.i.l.bf16 %v2710_v14  ;;  %v2898_v14 = vpack.i.bf16 %v572_v53, %v571_v17 }
 0x151   : > { %2879 = vrot.lane.b32.xlu0 %v2878_v1, %s3111_s9  ;;  %v2660_v52 = vpop.permute.xlu1 %2659  ;;  %v603_v1 = vld [vmem:[#allocation2 + $0x10a] sm:$0xff] }
 0x152   : > { %v2662_v23 = vunpack.i.h.bf16 %v2660_v52  ;;  %v2661_v37 = vunpack.i.l.bf16 %v2660_v52  ;;  %v3997_v33 = vsel %vm1739_vm4, %v1735_v29, %v2711_v27  ;;  %v4000_v35 = vsel %vm1739_vm4, %v1736_v4, %v2712_v10  ;;  %v579_v4 = vld [vmem:[#allocation2 + $0x169] sm:$0xff] }
 0x153   : > { %v2670_v50 = vpop.permute.xlu0 %2669  ;;  %v2908_v57 = vpack.i.bf16 %v604_v2, %v603_v1  ;;  %v555_v52 = vld [vmem:[#allocation2 + $0x49] sm:$0xff]  ;;  %v596_v1 = vld [vmem:[#allocation2 + $0xb2] sm:$0xff] }
 0x154   : > { %v1748_v46 = vsel %vm1739_vm4, %v3877_v30, %v2661_v37  ;;  %v1749_v9 = vsel %vm1739_vm4, %v3873_v20, %v2662_v23  ;;  %v2672_v42 = vunpack.i.h.bf16 %v2670_v50  ;;  %v2671_v48 = vunpack.i.l.bf16 %v2670_v50  ;;  %v611_v37 = vld [vmem:[#allocation2 + $0x16a] sm:$0xff]  ;;  %v612_v50 = vld [vmem:[#allocation2 + $0x172] sm:$0xff] }
 0x155   : > { %2889 = vrot.lane.b32.xlu2 %v2888_v41, %s3109_s7  ;;  %v556_v41 = vld [vmem:[#allocation2 + $0x51] sm:$0xff] }
 0x156   : > { %v4009_v19 = vsel %vm1739_vm4, %v3808_v63, %v2671_v48  ;;  %v4013_v29 = vsel %vm1739_vm4, %v3811_v56, %v2672_v42  ;;  %v2903_v63 = vpack.i.bf16 %v580_v55, %v579_v4  ;;  %v2918_v42 = vpack.i.bf16 %v556_v41, %v555_v52  ;;  %v563_v55 = vld [vmem:[#allocation2 + $0xa9] sm:$0xff]  ;;  %v541_v41 = vld [vmem:[#allocation2 + $0x120] sm:$0xff] }
 0x157   : > { %2884 = vrot.lane.b32.xlu1 %v2883_v7, %s3111_s9  ;;  %v2725_v30 = vpop.permute.xlu2 %2724 }
 0x158   : > { %v2727_v0 = vunpack.i.h.bf16 %v2725_v30  ;;  %v2726_v20 = vunpack.i.l.bf16 %v2725_v30  ;;  %v564_v30 = vld [vmem:[#allocation2 + $0xb1] sm:$0xff] }
 0x159   : > { %2894 = vrot.lane.b32.xlu0 %v3600_v3, %s3109_s7  ;;  %v2675_v62 = vpop.permute.xlu1 %2674 }
 0x15a   : > { %v2677_v59 = vunpack.i.h.bf16 %v2675_v62  ;;  %v2676_v8 = vunpack.i.l.bf16 %v2675_v62  ;;  %v4019_v56 = vsel %vm1772_vm5, %v1742_v12, %v2726_v20  ;;  %v4022_v39 = vsel %vm1772_vm5, %v1743_v11, %v2727_v0 }
 0x15b   : > { %v2685_v5 = vpop.permute.xlu0 %2684  ;;  %v2913_v20 = vpack.i.bf16 %v612_v50, %v611_v37 }
 0x15c   : > { %v1754_v10 = vsel %vm1739_vm4, %v3901_v24, %v2676_v8  ;;  %v1755_v3 = vsel %vm1739_vm4, %v3897_v61, %v2677_v59  ;;  %v2687_v27 = vunpack.i.h.bf16 %v2685_v5  ;;  %v2686_v32 = vunpack.i.l.bf16 %v2685_v5  ;;  %v595_v8 = vld [vmem:[#allocation2 + $0xaa] sm:$0xff] }
 0x15d   : > { %2904 = vrot.lane.b32.xlu2 %v2903_v63, %s3110_s8  ;;  %v2923_v59 = vpack.i.bf16 %v564_v30, %v563_v55  ;;  %v587_v5 = vld [vmem:[#allocation2 + $0x4a] sm:$0xff] }
 0x15e   : > { %v4031_v12 = vsel %vm1739_vm4, %v3834_v26, %v2686_v32  ;;  %v4035_v11 = vsel %vm1739_vm4, %v3837_v21, %v2687_v27  ;;  %v2933_v32 = vpack.i.bf16 %v596_v1, %v595_v8  ;;  %v574_v55 = vld [vmem:[#allocation2 + $0x129] sm:$0xff] }
 0x15f   : > { %2899 = vrot.lane.b32.xlu1 %v2898_v14, %s3110_s8  ;;  %v2740_v24 = vpop.permute.xlu2 %2739  ;;  %v588_v14 = vld [vmem:[#allocation2 + $0x52] sm:$0xff] }
 0x160   : > { %v2742_v23 = vunpack.i.h.bf16 %v2740_v24  ;;  %v2741_v61 = vunpack.i.l.bf16 %v2740_v24  ;;  %v542_v24 = vld [vmem:[#allocation2 + $0x128] sm:$0xff] }
 0x161   : > { %2909 = vrot.lane.b32.xlu0 %v2908_v57, %s3111_s9  ;;  %v2690_v7 = vpop.permute.xlu1 %2689 }
 0x162   : > { %v2692_v48 = vunpack.i.h.bf16 %v2690_v7  ;;  %v2691_v26 = vunpack.i.l.bf16 %v2690_v7  ;;  %v4040_v4 = vsel %vm1772_vm5, %v1748_v46, %v2741_v61  ;;  %v4043_v21 = vsel %vm1772_vm5, %v1749_v9, %v2742_v23 }
 0x163   : > { %v2700_v0 = vpop.permute.xlu0 %2699  ;;  %v2928_v61 = vpack.i.bf16 %v588_v14, %v587_v5 }
 0x164   : > { %v1760_v17 = vsel %vm1739_vm4, %v3925_v34, %v2691_v26  ;;  %v1761_v53 = vsel %vm1739_vm4, %v3921_v13, %v2692_v48  ;;  %v2702_v62 = vunpack.i.h.bf16 %v2700_v0  ;;  %v2701_v63 = vunpack.i.l.bf16 %v2700_v0  ;;  %v573_v26 = vld [vmem:[#allocation2 + $0x121] sm:$0xff] }
 0x165   : > { %2919 = vrot.lane.b32.xlu2 %v2918_v42, %s3110_s8  ;;  %v2938_v48 = vpack.i.bf16 %v542_v24, %v541_v41  ;;  %v549_v0 = vld [vmem:[#allocation2 + $0x180] sm:$0xff] }
 0x166   : > { %v4052_v46 = vsel %vm1739_vm4, %v3858_v31, %v2701_v63  ;;  %v4056_v9 = vsel %vm1739_vm4, %v3861_v51, %v2702_v62  ;;  %v2948_v63 = vpack.i.bf16 %v574_v55, %v573_v26 }
 0x167   : > { %2914 = vrot.lane.b32.xlu1 %v2913_v20, %s3111_s9  ;;  %v2755_v34 = vpop.permute.xlu2 %2754  ;;  %v550_v20 = vld [vmem:[#allocation2 + $0x188] sm:$0xff] }
 0x168   : > { %v2757_v2 = vunpack.i.h.bf16 %v2755_v34  ;;  %v2756_v13 = vunpack.i.l.bf16 %v2755_v34  ;;  %v2943_v34 = vpack.i.bf16 %v550_v20, %v549_v0  ;;  %v566_v0 = vld [vmem:[#allocation2 + $0xc9] sm:$0xff] }
 0x169   : > { %2924 = vrot.lane.b32.xlu0 %v2923_v59, %s3110_s8  ;;  %v2705_v27 = vpop.permute.xlu1 %2704 }
 0x16a   : > { %v2707_v57 = vunpack.i.h.bf16 %v2705_v27  ;;  %v2706_v31 = vunpack.i.l.bf16 %v2705_v27  ;;  %v4061_v52 = vsel %vm1772_vm5, %v1754_v10, %v2756_v13  ;;  %v4064_v51 = vsel %vm1772_vm5, %v1755_v3, %v2757_v2 }
 0x16b   : > { %v2715_v23 = vpop.permute.xlu0 %2714 }
 0x16c   : > { %v1766_v37 = vsel %vm1739_vm4, %v3949_v6, %v2706_v31  ;;  %v1767_v50 = vsel %vm1739_vm4, %v3945_v49, %v2707_v57  ;;  %v2717_v7 = vunpack.i.h.bf16 %v2715_v23  ;;  %v2716_v42 = vunpack.i.l.bf16 %v2715_v23  ;;  %v605_v57 = vld [vmem:[#allocation2 + $0x122] sm:$0xff] }
 0x16d   : > { %2934 = vrot.lane.b32.xlu2 %v2933_v32, %s3111_s9 }
 0x16e   : > { %v4073_v10 = vsel %vm1739_vm4, %v3884_v47, %v2716_v42  ;;  %v4077_v3 = vsel %vm1739_vm4, %v3887_v40, %v2717_v7 }
 0x16f   : > { %2929 = vrot.lane.b32.xlu1 %v2928_v61, %s3111_s9  ;;  %v2770_v6 = vpop.permute.xlu2 %2769  ;;  %v558_v61 = vld [vmem:[#allocation2 + $0x69] sm:$0xff] }
 0x170   : > { %v2772_v30 = vunpack.i.h.bf16 %v2770_v6  ;;  %v2771_v49 = vunpack.i.l.bf16 %v2770_v6 }
 0x171   : > { %2939 = vrot.lane.b32.xlu0 %v2938_v48, %s3109_s7  ;;  %v2720_v62 = vpop.permute.xlu1 %2719 }
 0x172   : > { %v2722_v59 = vunpack.i.h.bf16 %v2720_v62  ;;  %v2721_v47 = vunpack.i.l.bf16 %v2720_v62  ;;  %v4082_v8 = vsel %vm1772_vm5, %v1760_v17, %v2771_v49  ;;  %v4085_v40 = vsel %vm1772_vm5, %v1761_v53, %v2772_v30  ;;  %v589_v30 = vld [vmem:[#allocation2 + $0x62] sm:$0xff]  ;;  %v590_v49 = vld [vmem:[#allocation2 + $0x6a] sm:$0xff] }
 0x173   : > { %v2730_v1 = vpop.permute.xlu0 %2729  ;;  %v2978_v20 = vpack.i.bf16 %v590_v49, %v589_v30 }
 0x174   : > { %v4089_v2 = vsel %vm1772_vm5, %v3971_v15, %v2721_v47  ;;  %v4093_v13 = vsel %vm1772_vm5, %v3967_v22, %v2722_v59  ;;  %v2732_v5 = vunpack.i.h.bf16 %v2730_v1  ;;  %v2731_v14 = vunpack.i.l.bf16 %v2730_v1  ;;  %v606_v22 = vld [vmem:[#allocation2 + $0x12a] sm:$0xff] }
 0x175   : > { %2949 = vrot.lane.b32.xlu2 %v2948_v63, %s3110_s8  ;;  %v2958_v42 = vpack.i.bf16 %v606_v22, %v605_v57  ;;  %v598_v59 = vld [vmem:[#allocation2 + $0xca] sm:$0xff]  ;;  %v543_v22 = vld [vmem:[#allocation2 + $0x138] sm:$0xff] }
 0x176   : > { %v4098_v17 = vsel %vm1772_vm5, %v3908_v58, %v2731_v14  ;;  %v4102_v53 = vsel %vm1772_vm5, %v3911_v44, %v2732_v5  ;;  %v557_v44 = vld [vmem:[#allocation2 + $0x61] sm:$0xff]  ;;  %v551_v14 = vld [vmem:[#allocation2 + $0x198] sm:$0xff] }
 0x177   : > { %2944 = vrot.lane.b32.xlu1 %v2943_v34, %s3109_s7  ;;  %v2785_v15 = vpop.permute.xlu2 %2784 }
 0x178   : > { %v2787_v27 = vunpack.i.h.bf16 %v2785_v15  ;;  %v2786_v32 = vunpack.i.l.bf16 %v2785_v15  ;;  %v552_v15 = vld [vmem:[#allocation2 + $0x1a0] sm:$0xff] }
 0x179   : > { %2954 = vrot.lane.b32.xlu0 %v3705_v60, %s3110_s8  ;;  %v2735_v31 = vpop.permute.xlu1 %2734 }
 0x17a   : > { %v2737_v41 = vunpack.i.h.bf16 %v2735_v31  ;;  %v2736_v24 = vunpack.i.l.bf16 %v2735_v31  ;;  %v4108_v58 = vsel %vm1772_vm5, %v1766_v37, %v2786_v32  ;;  %v4111_v23 = vsel %vm1772_vm5, %v1767_v50, %v2787_v27  ;;  %v544_v31 = vld [vmem:[#allocation2 + $0x140] sm:$0xff] }
 0x17b   : > { %v2745_v7 = vpop.permute.xlu0 %2744  ;;  %v2968_v37 = vpack.i.bf16 %v558_v61, %v557_v44 }
 0x17c   : > { %v1779_v48 = vsel %vm1772_vm5, %v3992_v28, %v2736_v24  ;;  %v1780_v26 = vsel %vm1772_vm5, %v3988_v18, %v2737_v41  ;;  %v2747_v60 = vunpack.i.h.bf16 %v2745_v7  ;;  %v2746_v55 = vunpack.i.l.bf16 %v2745_v7  ;;  %v565_v18 = vld [vmem:[#allocation2 + $0xc1] sm:$0xff]  ;;  %v575_v7 = vld [vmem:[#allocation2 + $0x139] sm:$0xff] }
 0x17d   : > { %2964 = vrot.lane.b32.xlu2 %v3863_v36, %s3111_s9 }
 0x17e   : > { %v4121_v50 = vsel %vm1772_vm5, %v3932_v38, %v2746_v55  ;;  %v4125_v6 = vsel %vm1772_vm5, %v3935_v16, %v2747_v60  ;;  %v597_v38 = vld [vmem:[#allocation2 + $0xc2] sm:$0xff]  ;;  %v2973_v16 = vpack.i.bf16 %v566_v0, %v565_v18  ;;  %v2988_v55 = vpack.i.bf16 %v544_v31, %v543_v22 }
 0x17f   : > { %2959 = vrot.lane.b32.xlu1 %v2958_v42, %s3111_s9  ;;  %v4128_v28 = vpop.permute.xlu2 %2799  ;;  %v2983_v5 = vpack.i.bf16 %v598_v59, %v597_v38  ;;  %v576_v42 = vld [vmem:[#allocation2 + $0x141] sm:$0xff]  ;;  %v583_v38 = vld [vmem:[#allocation2 + $0x199] sm:$0xff] }
 0x180   : > { %v584_v59 = vld [vmem:[#allocation2 + $0x1a1] sm:$0xff] }
 0x181   : > { %2969 = vrot.lane.b32.xlu0 %v2968_v37, %s3110_s8  ;;  %v2750_v36 = vpop.permute.xlu1 %2749  ;;  %v616_v22 = vld [vmem:[#allocation2 + $0x1a2] sm:$0xff] }
 0x182   : > { %v2752_v62 = vunpack.i.h.bf16 %v2750_v36  ;;  %v2751_v63 = vunpack.i.l.bf16 %v2750_v36  ;;  %v607_v36 = vld [vmem:[#allocation2 + $0x13a] sm:$0xff] }
 0x183   : > { %v4131_v47 = vpop.permute.xlu0 %2759 }
 0x184   : > { %v1785_v1 = vsel %vm1772_vm5, %v4009_v19, %v2751_v63  ;;  %v1786_v34 = vsel %vm1772_vm5, %v4013_v29, %v2752_v62  ;;  %v2993_v19 = vpack.i.bf16 %v552_v15, %v551_v14  ;;  %v2260_v62 = vld [vmem:[%s4546_s1 + $0x8] sm:$0x30]  ;;  %v3112_v14 = vmov 65535  }
 0x185   : > { %2979 = vrot.lane.b32.xlu2 %v2978_v20, %s3111_s9  ;;  %v1985_v15 = vsel %vm1983_vm7, 4294967295, %v3112_v14 }
 0x187   : > { %2974 = vrot.lane.b32.xlu1 %v2973_v16, %s3110_s8  ;;  %v2815_v27 = vpop.permute.xlu2 %2814 }
 0x188   : > { %v2817_v32 = vunpack.i.h.bf16 %v2815_v27  ;;  %v2816_v57 = vunpack.i.l.bf16 %v2815_v27 }
 0x189   : > { %2984 = vrot.lane.b32.xlu0 %v2983_v5, %s3111_s9  ;;  %v2765_v41 = vpop.permute.xlu1 %2764 }
 0x18a   : > { %v2767_v24 = vunpack.i.h.bf16 %v2765_v41  ;;  %v2766_v44 = vunpack.i.l.bf16 %v2765_v41  ;;  %v4141_v29 = vsel %vm1805_vm6, %v1779_v48, %v2816_v57  ;;  %v4144_v61 = vsel %vm1805_vm6, %v1780_v26, %v2817_v32  ;;  %v615_v57 = vld [vmem:[#allocation2 + $0x19a] sm:$0xff] }
 0x18b   : > { %v2775_v60 = vpop.permute.xlu0 %2774  ;;  %v2998_v48 = vpack.i.bf16 %v576_v42, %v575_v7  ;;  %v3003_v41 = vpack.i.bf16 %v584_v59, %v583_v38  ;;  %v3013_v7 = vpack.i.bf16 %v616_v22, %v615_v57  ;;  %v599_v57 = vld [vmem:[#allocation2 + $0xda] sm:$0xff]  ;;  %v600_v22 = vld [vmem:[#allocation2 + $0xe2] sm:$0xff] }
 0x18c   : > { %v4148_v37 = vsel %vm1772_vm5, %v4031_v12, %v2766_v44  ;;  %v4152_v30 = vsel %vm1772_vm5, %v4035_v11, %v2767_v24  ;;  %v2777_v49 = vunpack.i.h.bf16 %v2775_v60  ;;  %v2776_v18 = vunpack.i.l.bf16 %v2775_v60  ;;  %v608_v12 = vld [vmem:[#allocation2 + $0x142] sm:$0xff] }
 0x18d   : > { %2994 = vrot.lane.b32.xlu2 %v2993_v19, %s3109_s7  ;;  %v2235_v11 = vld [vmem:[%s4546_s1 + $0x8] sm:$0xf]  ;;  %v3008_v16 = vpack.i.bf16 %v608_v12, %v607_v36  ;;  %v1986_v19 = vsel %vm1984_vm8, %v1985_v15, 0 }
 0x18e   : > { %v4157_v26 = vsel %vm1772_vm5, %v3976_v43, %v2776_v18  ;;  %v4161_v0 = vsel %vm1772_vm5, %v3979_v45, %v2777_v49  ;;  %v2236_v5 = vor.u32 %v2260_v62, %v2235_v11  ;;  %v2259_v18 = vld [vmem:[%s4546_s1] sm:$0xff] }
 0x18f   : > { %2989 = vrot.lane.b32.xlu1 %v2988_v55, %s3109_s7  ;;  %v2830_v20 = vpop.permute.xlu2 %2829  ;;  %v568_v55 = vld [vmem:[#allocation2 + $0xe1] sm:$0xff]  ;;  %s2159_s7 = sshll.u32 %s2156_s6, 4  ;;  %s2160_s7 = int_to_ptr.hbm [resolvable:$true] %s2159_s7 }
 0x190   : > { %v2832_v43 = vunpack.i.h.bf16 %v2830_v20  ;;  %v2831_v63 = vunpack.i.l.bf16 %v2830_v20  ;;  %v1988_v42 = vand.u32 %v2236_v5, %v1986_v19  ;;  %v560_v36 = vld [vmem:[#allocation2 + $0x81] sm:$0xff] }
 0x191   : > { %2999 = vrot.lane.b32.xlu0 %v2998_v48, %s3110_s8  ;;  %v4171_v45 = vpop.permute.xlu1 %2779  ;;  %v559_v48 = vld [vmem:[#allocation2 + $0x79] sm:$0xff]  ;;  %v592_v62 = vld [vmem:[#allocation2 + $0x82] sm:$0xff] }
 0x192   : > { %v4174_v27 = vsel %vm1805_vm6, %v1785_v1, %v2831_v63  ;;  %v4177_v32 = vsel %vm1805_vm6, %v1786_v34, %v2832_v43  ;;  %v567_v34 = vld [vmem:[#allocation2 + $0xd9] sm:$0xff]  ;;  %2342 = vmatpush.bf16.msra.mxu2 %v1988_v42  ;;  %2343 = vmatpush.bf16.msra.mxu3 %v1988_v42  ;;  %v3018_v63 = vpack.i.bf16 %v560_v36, %v559_v48  ;;  %v2761_v48 = vunpack.i.l.bf16 %v4131_v47 }
 0x193   : > { %v2790_v31 = vpop.permute.xlu0 %2789  ;;  %1996 = vmatpush.bf16.msra.mxu0 %v1988_v42  ;;  %2341 = vmatpush.bf16.msra.mxu1 %v1988_v42  ;;  %v591_v11 = vld [vmem:[#allocation2 + $0x7a] sm:$0xff] }
 0x194   : > { %v2792_v24 = vunpack.i.h.bf16 %v2790_v31  ;;  %v2791_v44 = vunpack.i.l.bf16 %v2790_v31  ;;  %v3028_v14 = vpack.i.bf16 %v592_v62, %v591_v11 }
 0x195   : > { %3009 = vrot.lane.b32.xlu2 %v3008_v16, %s3111_s9 }
 0x196   : > { %v4182_v60 = vsel %vm1772_vm5, %v3997_v33, %v2791_v44  ;;  %v4186_v1 = vsel %vm1772_vm5, %v4000_v35, %v2792_v24  ;;  %v3023_v35 = vpack.i.bf16 %v568_v55, %v567_v34  ;;  %2345 = vmatpush.bf16.msra.mxu2 %v2259_v18  ;;  %2346 = vmatpush.bf16.msra.mxu3 %v2259_v18 }
 0x197   : > { %3004 = vrot.lane.b32.xlu1 %v3003_v41, %s3110_s8  ;;  %v4189_v49 = vpop.permute.xlu2 %2844  ;;  %1997 = vmatpush.bf16.msra.mxu0 %v2259_v18  ;;  %v3033_v44 = vpack.i.bf16 %v600_v22, %v599_v57 }
 0x198   : > { %2344 = vmatpush.bf16.msra.mxu1 %v2259_v18  ;;  %v2847_v57 = vunpack.i.h.bf16 %v4189_v49 }
 0x199   : > { %3014 = vrot.lane.b32.xlu0 %v3013_v7, %s3111_s9  ;;  %v2795_v33 = vpop.permute.xlu1 %2794 }
 0x19a   : > { %v2797_v12 = vunpack.i.h.bf16 %v2795_v33  ;;  %v2796_v20 = vunpack.i.l.bf16 %v2795_v33 }
 0x19b   : > { %v2805_v43 = vpop.permute.xlu0 %2804 }
 0x19c   : > { %v4197_v38 = vsel %vm1772_vm5, %v4073_v10, %v2796_v20  ;;  %v4201_v59 = vsel %vm1772_vm5, %v4077_v3, %v2797_v12  ;;  %v2807_v16 = vunpack.i.h.bf16 %v2805_v43  ;;  %v2806_v5 = vunpack.i.l.bf16 %v2805_v43 }
 0x19d   : > { %3024 = vrot.lane.b32.xlu2 %v3023_v35, %s3110_s8  ;;  %v1789_v35 = vsel %vm1772_vm5, %v3955_v25, %v2761_v48  ;;  %v2781_v25 = vunpack.i.l.bf16 %v4171_v45 }
 0x19e   : > { %v4206_v15 = vsel %vm1805_vm6, %v4019_v56, %v2806_v5  ;;  %v4210_v10 = vsel %vm1805_vm6, %v4022_v39, %v2807_v16 }
 0x19f   : > { %3019 = vrot.lane.b32.xlu1 %v3018_v63, %s3110_s8  ;;  %v2860_v3 = vpop.permute.xlu2 %2859  ;;  %s2145_s8 = scalar_lea.sflag [#allocation4], %s161_s25 }
 0x1a0   : > { %v2862_v43 = vunpack.i.h.bf16 %v2860_v3 }
 0x1a1   : > { %3029 = vrot.lane.b32.xlu0 %v3028_v14, %s3111_s9  ;;  %v2810_v31 = vpop.permute.xlu1 %2809  ;;  %v2782_v14 = vunpack.i.h.bf16 %v4171_v45 }
 0x1a2   : > { %v2812_v41 = vunpack.i.h.bf16 %v2810_v31  ;;  %v2811_v19 = vunpack.i.l.bf16 %v2810_v31 }
 0x1a3   : > { %v4214_v24 = vpop.permute.xlu0 %2819  ;;  %v1798_v45 = vsel %vm1772_vm5, %v4056_v9, %v2782_v14 }
 0x1a4   : > { %v4218_v56 = vsel %vm1805_vm6, %v4098_v17, %v2811_v19  ;;  %v4222_v39 = vsel %vm1805_vm6, %v4102_v53, %v2812_v41  ;;  %v2762_v53 = vunpack.i.h.bf16 %v4131_v47 }
 0x1a6   : > { %v1790_v62 = vsel %vm1772_vm5, %v3958_v54, %v2762_v53 }
 0x1a7   : > { %3034 = vrot.lane.b32.xlu1 %v3033_v44, %s3111_s9  ;;  %v4225_v7 = vpop.permute.xlu2 %2874  ;;  %s3053_s9 = sshra.s32 %s2160_s7, 4  ;;  %s3054_s9 = int_to_ptr.hbm [resolvable:$true] %s3053_s9 }
 0x1a8   : > { %s3055_s10 = scalar_lea.hbm %s3054_s9, 128  ;;  %p3060_p0 = scmp.lt.s32.totalorder %s3054_s9, %s4548_s3 }
 0x1a9   : > { %v4227_v42 = vpop.permute.xlu1 %2824  ;;  %p3056_p11 = scmp.ne.s32.totalorder %s3054_s9, %s3055_s10  ;;  %p3061_p1 = scmp.lt.s32.totalorder %s3059_s19, %s3055_s10 }
 0x1ab   : > { %v2835_v34 = vpop.permute.xlu0 %2834  ;;  %p3057_p12 = pnand %p3056_p11, %p3173_p5  ;;  %p3062_p2 = por %p3061_p1, %p3060_p0 }
 0x1ac   : > { %v2837_v55 = vunpack.i.h.bf16 %v2835_v34  ;;  %v2836_v18 = vunpack.i.l.bf16 %v2835_v34  ;;  %v1797_v34 = vsel %vm1772_vm5, %v4052_v46, %v2781_v25 }
 0x1ad   : > { %p3058_p13 = pneg %p3057_p12 }
 0x1ae   : > { %v4232_v36 = vsel %vm1805_vm6, %v4061_v52, %v2836_v18  ;;  %v4236_v17 = vsel %vm1805_vm6, %v4064_v51, %v2837_v55  ;;  %v2861_v52 = vunpack.i.l.bf16 %v2860_v3  ;;  %v2846_v3 = vunpack.i.l.bf16 %v4189_v49 }
 0x1af   : > { %v4241_v11 = vpop.permute.xlu2 %2889  ;;  %v1831_v49 = vsel %vm1805_vm6, %v1798_v45, %v2847_v57  ;;  %p3063_p3 = pnand %p3062_p2, %p3058_p13 }
 0x1b0   : > { %v1830_v48 = vsel %vm1805_vm6, %v1797_v34, %v2846_v3 }
 0x1b1   : > { %v2840_v33 = vpop.permute.xlu1 %2839 }
 0x1b2   : > { %v2842_v12 = vunpack.i.h.bf16 %v2840_v33  ;;  %v2841_v20 = vunpack.i.l.bf16 %v2840_v33 }
 0x1b3   : > { %v2850_v63 = vpop.permute.xlu0 %2849 }
 0x1b4   : > { %v1822_v51 = vsel %vm1805_vm6, %v1789_v35, %v2841_v20  ;;  %v1823_v16 = vsel %vm1805_vm6, %v1790_v62, %v2842_v12  ;;  %v2852_v47 = vunpack.i.h.bf16 %v2850_v63  ;;  %v2851_v5 = vunpack.i.l.bf16 %v2850_v63 }
 0x1b6   : > { %v1855_v22 = vsel %vm1838_vm10, %v1822_v51, %v2851_v5  ;;  %v1856_v54 = vsel %vm1838_vm10, %v1823_v16, %v2852_v47 }
 0x1b7   : > { %v1888_v31 = vsel %vm1871_vm9, %v1855_v22, %v2861_v52  ;;  %v1889_v41 = vsel %vm1871_vm9, %v1856_v54, %v2862_v43  ;;  %v4264_v12 = vpop.permute.xlu2 %2904  ;;  %v2802_v43 = vunpack.i.h.bf16 %v4128_v28  ;;  %v2801_v52 = vunpack.i.l.bf16 %v4128_v28 }
 0x1b8   : > { %v1912_v19 = vpack.c.bf16 %v1889_v41, %v1888_v31  ;;  %v2822_v28 = vunpack.i.h.bf16 %v4214_v24  ;;  %v2821_v31 = vunpack.i.l.bf16 %v4214_v24 }
 0x1b9   : > { %v2855_v44 = vpop.permute.xlu1 %2854  ;;  %v1806_v5 = vsel %vm1805_vm6, %v4089_v2, %v2801_v52  ;;  %v1807_v14 = vsel %vm1805_vm6, %v4093_v13, %v2802_v43  ;;  %v2876_v13 = vunpack.i.l.bf16 %v4225_v7 }
 0x1ba   : > { %v2857_v55 = vunpack.i.h.bf16 %v2855_v44  ;;  %v2856_v18 = vunpack.i.l.bf16 %v2855_v44  ;;  %2245 = vmatmul.msk.bf16.vlgmr.msra.gmra.mxu2 %vm1934_vm11, %v1912_v19  ;;  %v2877_v44 = vunpack.i.h.bf16 %v4225_v7  ;;  %v1815_v24 = vsel %vm1805_vm6, %v4043_v21, %v2822_v28 }
 0x1bb   : > { %v2865_v53 = vpop.permute.xlu0 %2864 }
 0x1bc   : > { %v1863_v33 = vsel %vm1838_vm10, %v1830_v48, %v2856_v18  ;;  %v1864_v35 = vsel %vm1838_vm10, %v1831_v49, %v2857_v55  ;;  %v2867_v20 = vunpack.i.h.bf16 %v2865_v53  ;;  %v2866_v46 = vunpack.i.l.bf16 %v2865_v53 }
 0x1bd   : > { %v1814_v55 = vsel %vm1805_vm6, %v4040_v4, %v2821_v31  ;;  %v1848_v53 = vsel %vm1838_vm10, %v1815_v24, %v2877_v44  ;;  %v2827_v31 = vunpack.i.h.bf16 %v4227_v42 }
 0x1be   : > { %v1896_v62 = vsel %vm1871_vm9, %v1863_v33, %v2866_v46  ;;  %v1897_v9 = vsel %vm1871_vm9, %v1864_v35, %v2867_v20  ;;  %v1847_v49 = vsel %vm1838_vm10, %v1814_v55, %v2876_v13  ;;  %v2892_v46 = vunpack.i.h.bf16 %v4241_v11 }
 0x1bf   : > { %v1916_v63 = vpack.c.bf16 %v1897_v9, %v1896_v62  ;;  %v4279_v41 = vpop.permute.xlu2 %2919  ;;  %v2891_v62 = vunpack.i.l.bf16 %v4241_v11 }
 0x1c1   : > { %2249 = vmatmul.msk.bf16.vlgmr.msra.gmra.mxu3 %vm1934_vm11, %v1916_v63  ;;  %v2870_v51 = vpop.permute.xlu1 %2869  ;;  %v1824_v52 = vsel %vm1805_vm6, %v4148_v37, %v2891_v62  ;;  %v1825_v63 = vsel %vm1805_vm6, %v4152_v30, %v2892_v46  ;;  %v2906_v37 = vunpack.i.l.bf16 %v4264_v12  ;;  %v2921_v46 = vunpack.i.l.bf16 %v4279_v41 }
 0x1c2   : > { %v2872_v16 = vunpack.i.h.bf16 %v2870_v51  ;;  %v2871_v47 = vunpack.i.l.bf16 %v2870_v51 }
 0x1c3   : > { %v2880_v25 = vpop.permute.xlu0 %2879 }
 0x1c4   : > { %v1839_v57 = vsel %vm1838_vm10, %v1806_v5, %v2871_v47  ;;  %v1840_v22 = vsel %vm1838_vm10, %v1807_v14, %v2872_v16  ;;  %v2882_v54 = vunpack.i.h.bf16 %v2880_v25  ;;  %v2881_v3 = vunpack.i.l.bf16 %v2880_v25 }
 0x1c6   : > { %v1872_v19 = vsel %vm1871_vm9, %v1839_v57, %v2881_v3  ;;  %v1873_v2 = vsel %vm1871_vm9, %v1840_v22, %v2882_v54  ;;  %v2907_v54 = vunpack.i.h.bf16 %v4264_v12 }
 0x1c7   : > { %v1904_v34 = vpack.c.bf16 %v1873_v2, %v1872_v19  ;;  %v2935_v4 = vpop.permute.xlu2 %2934  ;;  %v2826_v19 = vunpack.i.l.bf16 %v4227_v42 }
 0x1c8   : > { %v2936_v12 = vunpack.i.l.bf16 %v2935_v4 }
 0x1c9   : > { %2237 = vmatmul.msk.bf16.vlgmr.msra.gmra.mxu0 %vm1934_vm11, %v1904_v34  ;;  %v2885_v45 = vpop.permute.xlu1 %2884 }
 0x1ca   : > { %v2887_v18 = vunpack.i.h.bf16 %v2885_v45  ;;  %v2886_v48 = vunpack.i.l.bf16 %v2885_v45  ;;  %v2937_v45 = vunpack.i.h.bf16 %v2935_v4 }
 0x1cb   : > { %v2895_v33 = vpop.permute.xlu0 %2894 }
 0x1cc   : > { %v1880_v35 = vsel %vm1871_vm9, %v1847_v49, %v2886_v48  ;;  %v1881_v7 = vsel %vm1871_vm9, %v1848_v53, %v2887_v18  ;;  %v2897_v51 = vunpack.i.h.bf16 %v2895_v33  ;;  %v2896_v16 = vunpack.i.l.bf16 %v2895_v33 }
 0x1cd   : > { %v1908_v20 = vpack.c.bf16 %v1881_v7, %v1880_v35  ;;  %v1816_v49 = vsel %vm1805_vm6, %v4121_v50, %v2826_v19  ;;  %v1817_v53 = vsel %vm1805_vm6, %v4125_v6, %v2827_v31 }
 0x1ce   : > { %v1832_v30 = vsel %vm1805_vm6, %v4108_v58, %v2896_v16  ;;  %v1833_v28 = vsel %vm1805_vm6, %v4111_v23, %v2897_v51 }
 0x1cf   : > { %2241 = vmatmul.msk.bf16.vlgmr.msra.gmra.mxu1 %vm1934_vm11, %v1908_v20  ;;  %v4314_v44 = vpop.permute.xlu2 %2949  ;;  %v1865_v24 = vsel %vm1838_vm10, %v1832_v30, %v2906_v37  ;;  %v1866_v58 = vsel %vm1838_vm10, %v1833_v28, %v2907_v54  ;;  %v2922_v20 = vunpack.i.h.bf16 %v4279_v41 }
 0x1d1   : > { %v2900_v21 = vpop.permute.xlu1 %2899 }
 0x1d2   : > { %v2902_v9 = vunpack.i.h.bf16 %v2900_v21  ;;  %v2901_v43 = vunpack.i.l.bf16 %v2900_v21 }
 0x1d3   : > { %v2910_v47 = vpop.permute.xlu0 %2909 }
 0x1d4   : > { %v1857_v5 = vsel %vm1838_vm10, %v1824_v52, %v2901_v43  ;;  %v1858_v14 = vsel %vm1838_vm10, %v1825_v63, %v2902_v9  ;;  %v2912_v11 = vunpack.i.h.bf16 %v2910_v47  ;;  %v2911_v25 = vunpack.i.l.bf16 %v2910_v47 }
 0x1d5   : > { %v1841_v43 = vsel %vm1838_vm10, %v4206_v15, %v2921_v46  ;;  %v1842_v52 = vsel %vm1838_vm10, %v4210_v10, %v2922_v20 }
 0x1d6   : > { %v1890_v57 = vsel %vm1871_vm9, %v1857_v5, %v2911_v25  ;;  %v1891_v22 = vsel %vm1871_vm9, %v1858_v14, %v2912_v11 }
 0x1d7   : > { %v1913_v3 = vpack.c.bf16 %v1891_v22, %v1890_v57  ;;  %v2965_v41 = vpop.permute.xlu2 %2964 }
 0x1d8   : > { %v2967_v25 = vunpack.i.h.bf16 %v2965_v41  ;;  %v2966_v57 = vunpack.i.l.bf16 %v2965_v41 }
 0x1d9   : > { %2246 = vmatmul.msk.bf16.gmra.mxu2 %vm1934_vm11, %v1913_v3  ;;  %v2915_v2 = vpop.permute.xlu1 %2914 }
 0x1da   : > { %v2917_v13 = vunpack.i.h.bf16 %v2915_v2  ;;  %v2916_v34 = vunpack.i.l.bf16 %v2915_v2  ;;  %v2952_v2 = vunpack.i.h.bf16 %v4314_v44 }
 0x1db   : > { %v2925_v55 = vpop.permute.xlu0 %2924 }
 0x1dc   : > { %v2927_v18 = vunpack.i.h.bf16 %v2925_v55  ;;  %v2926_v23 = vunpack.i.l.bf16 %v2925_v55  ;;  %v1898_v48 = vsel %vm1871_vm9, %v1865_v24, %v2916_v34  ;;  %v1899_v42 = vsel %vm1871_vm9, %v1866_v58, %v2917_v13 }
 0x1dd   : > { %v1917_v33 = vpack.c.bf16 %v1899_v42, %v1898_v48  ;;  %v2951_v13 = vunpack.i.l.bf16 %v4314_v44 }
 0x1de   : > { %v1849_v35 = vsel %vm1838_vm10, %v1816_v49, %v2926_v23  ;;  %v1850_v7 = vsel %vm1838_vm10, %v1817_v53, %v2927_v18 }
 0x1df   : > { %2250 = vmatmul.msk.bf16.gmra.mxu3 %vm1934_vm11, %v1917_v33  ;;  %v1882_v62 = vsel %vm1871_vm9, %v1849_v35, %v2936_v12  ;;  %v1883_v4 = vsel %vm1871_vm9, %v1850_v7, %v2937_v45  ;;  %v2980_v28 = vpop.permute.xlu2 %2979 }
 0x1e0   : > { %v1909_v21 = vpack.c.bf16 %v1883_v4, %v1882_v62  ;;  %v2982_v18 = vunpack.i.h.bf16 %v2980_v28  ;;  %v2981_v23 = vunpack.i.l.bf16 %v2980_v28 }
 0x1e1   : > { %v2930_v50 = vpop.permute.xlu1 %2929 }
 0x1e2   : > { %2242 = vmatmul.msk.bf16.gmra.mxu1 %vm1934_vm11, %v1909_v21  ;;  %v2932_v6 = vunpack.i.h.bf16 %v2930_v50  ;;  %v2931_v9 = vunpack.i.l.bf16 %v2930_v50 }
 0x1e3   : > { %v2940_v63 = vpop.permute.xlu0 %2939 }
 0x1e4   : > { %v1874_v51 = vsel %vm1871_vm9, %v1841_v43, %v2931_v9  ;;  %v1875_v16 = vsel %vm1871_vm9, %v1842_v52, %v2932_v6  ;;  %v2942_v22 = vunpack.i.h.bf16 %v2940_v63  ;;  %v2941_v54 = vunpack.i.l.bf16 %v2940_v63 }
 0x1e5   : > { %v1905_v47 = vpack.c.bf16 %v1875_v16, %v1874_v51 }
 0x1e7   : > { %2238 = vmatmul.msk.bf16.gmra.mxu0 %vm1934_vm11, %v1905_v47  ;;  %v2995_v62 = vpop.permute.xlu2 %2994 }
 0x1e9   : > { %v2945_v5 = vpop.permute.xlu1 %2944 }
 0x1ea   : > { %v2947_v14 = vunpack.i.h.bf16 %v2945_v5  ;;  %v2946_v11 = vunpack.i.l.bf16 %v2945_v5 }
 0x1eb   : > { %v2955_v15 = vpop.permute.xlu0 %2954 }
 0x1ec   : > { %v1834_v10 = vsel %vm1805_vm6, %v4182_v60, %v2946_v11  ;;  %v1835_v37 = vsel %vm1805_vm6, %v4186_v1, %v2947_v14  ;;  %v2957_v3 = vunpack.i.h.bf16 %v2955_v15  ;;  %v2956_v30 = vunpack.i.l.bf16 %v2955_v15 }
 0x1ed   : > { %v1826_v60 = vsel %vm1805_vm6, %v4082_v8, %v2941_v54  ;;  %v1827_v1 = vsel %vm1805_vm6, %v4085_v40, %v2942_v22 }
 0x1ee   : > { %v1867_v31 = vsel %vm1838_vm10, %v1834_v10, %v2956_v30  ;;  %v1868_v19 = vsel %vm1838_vm10, %v1835_v37, %v2957_v3  ;;  %v1859_v44 = vsel %vm1838_vm10, %v1826_v60, %v2951_v13  ;;  %v1860_v42 = vsel %vm1838_vm10, %v1827_v1, %v2952_v2 }
 0x1ef   : > { %v1900_v34 = vsel %vm1871_vm9, %v1867_v31, %v2966_v57  ;;  %v1901_v45 = vsel %vm1871_vm9, %v1868_v19, %v2967_v25  ;;  %v3010_v47 = vpop.permute.xlu2 %3009  ;;  %v2997_v37 = vunpack.i.h.bf16 %v2995_v62  ;;  %v2996_v3 = vunpack.i.l.bf16 %v2995_v62 }
 0x1f0   : > { %v1918_v12 = vpack.c.bf16 %v1901_v45, %v1900_v34  ;;  %v3012_v11 = vunpack.i.h.bf16 %v3010_v47  ;;  %v3011_v25 = vunpack.i.l.bf16 %v3010_v47 }
 0x1f1   : > { %v2960_v55 = vpop.permute.xlu1 %2959 }
 0x1f2   : > { %v2962_v24 = vunpack.i.h.bf16 %v2960_v55  ;;  %v2961_v58 = vunpack.i.l.bf16 %v2960_v55  ;;  %2251 = vmatmul.msk.bf16.gmra.mxu3 %vm1934_vm11, %v1918_v12 }
 0x1f3   : > { %v2970_v48 = vpop.permute.xlu0 %2969 }
 0x1f4   : > { %v2972_v49 = vunpack.i.h.bf16 %v2970_v48  ;;  %v2971_v53 = vunpack.i.l.bf16 %v2970_v48  ;;  %v1892_v8 = vsel %vm1871_vm9, %v1859_v44, %v2961_v58  ;;  %v1893_v33 = vsel %vm1871_vm9, %v1860_v42, %v2962_v24 }
 0x1f5   : > { %v1914_v40 = vpack.c.bf16 %v1893_v33, %v1892_v8 }
 0x1f6   : > { %v1843_v35 = vsel %vm1838_vm10, %v4218_v56, %v2971_v53  ;;  %v1844_v7 = vsel %vm1838_vm10, %v4222_v39, %v2972_v49 }
 0x1f7   : > { %2247 = vmatmul.msk.bf16.gmra.mxu2 %vm1934_vm11, %v1914_v40  ;;  %v1876_v20 = vsel %vm1871_vm9, %v1843_v35, %v2981_v23  ;;  %v1877_v46 = vsel %vm1871_vm9, %v1844_v7, %v2982_v18  ;;  %v3025_v44 = vpop.permute.xlu2 %3024 }
 0x1f8   : > { %v1906_v4 = vpack.c.bf16 %v1877_v46, %v1876_v20  ;;  %v3027_v40 = vunpack.i.h.bf16 %v3025_v44  ;;  %v3026_v35 = vunpack.i.l.bf16 %v3025_v44 }
 0x1f9   : > { %v2975_v21 = vpop.permute.xlu1 %2974 }
 0x1fa   : > { %2239 = vmatmul.msk.bf16.gmra.mxu0 %vm1934_vm11, %v1906_v4  ;;  %v2977_v50 = vunpack.i.h.bf16 %v2975_v21  ;;  %v2976_v6 = vunpack.i.l.bf16 %v2975_v21 }
 0x1fb   : > { %v2985_v9 = vpop.permute.xlu0 %2984 }
 0x1fc   : > { %v1851_v56 = vsel %vm1838_vm10, %v4174_v27, %v2976_v6  ;;  %v1852_v39 = vsel %vm1838_vm10, %v4177_v32, %v2977_v50  ;;  %v2987_v43 = vunpack.i.h.bf16 %v2985_v9  ;;  %v2986_v52 = vunpack.i.l.bf16 %v2985_v9  ;;  %v4409_v6 = vld [vmem:[%s4547_s2] ss:$0 sm:$0xff] }
 0x1fe   : > { %v1884_v63 = vsel %vm1871_vm9, %v1851_v56, %v2986_v52  ;;  %v1885_v41 = vsel %vm1871_vm9, %v1852_v39, %v2987_v43 }
 0x1ff   : > { %v1910_v51 = vpack.c.bf16 %v1885_v41, %v1884_v63 }
 0x201   : > { %2243 = vmatmul.msk.bf16.gmra.mxu1 %vm1934_vm11, %v1910_v51  ;;  %v2990_v16 = vpop.permute.xlu1 %2989 }
 0x202   : > { %v2992_v5 = vunpack.i.h.bf16 %v2990_v16  ;;  %v2991_v14 = vunpack.i.l.bf16 %v2990_v16 }
 0x203   : > { %v3000_v57 = vpop.permute.xlu0 %2999 }
 0x204   : > { %v1828_v27 = vsel %vm1805_vm6, %v4157_v26, %v2991_v14  ;;  %v1829_v32 = vsel %vm1805_vm6, %v4161_v0, %v2992_v5  ;;  %v3002_v22 = vunpack.i.h.bf16 %v3000_v57  ;;  %v3001_v54 = vunpack.i.l.bf16 %v3000_v57 }
 0x205   : > { %v1836_v26 = vsel %vm1805_vm6, %v4197_v38, %v2996_v3  ;;  %v1837_v0 = vsel %vm1805_vm6, %v4201_v59, %v2997_v37 }
 0x206   : > { %v1861_v15 = vsel %vm1838_vm10, %v1828_v27, %v3001_v54  ;;  %v1862_v10 = vsel %vm1838_vm10, %v1829_v32, %v3002_v22 }
 0x207   : > { %v1894_v30 = vsel %vm1871_vm9, %v1861_v15, %v3011_v25  ;;  %v1895_v28 = vsel %vm1871_vm9, %v1862_v10, %v3012_v11 }
 0x208   : > { %v1915_v31 = vpack.c.bf16 %v1895_v28, %v1894_v30 }
 0x209   : > { %v3005_v19 = vpop.permute.xlu1 %3004 }
 0x20a   : > { %v3007_v2 = vunpack.i.h.bf16 %v3005_v19  ;;  %v3006_v13 = vunpack.i.l.bf16 %v3005_v19  ;;  %2248 = vmatmul.msk.bf16.gmra.mxu2 %vm1934_vm11, %v1915_v31 }
 0x20b   : > { %v3015_v34 = vpop.permute.xlu0 %3014 }
 0x20c   : > { %v1869_v45 = vsel %vm1838_vm10, %v1836_v26, %v3006_v13  ;;  %v1870_v60 = vsel %vm1838_vm10, %v1837_v0, %v3007_v2  ;;  %v3017_v1 = vunpack.i.h.bf16 %v3015_v34  ;;  %v3016_v12 = vunpack.i.l.bf16 %v3015_v34 }
 0x20e   : > { %v1902_v55 = vsel %vm1871_vm9, %v1869_v45, %v3016_v12  ;;  %v1903_v24 = vsel %vm1871_vm9, %v1870_v60, %v3017_v1 }
 0x20f   : > { %v1919_v58 = vpack.c.bf16 %v1903_v24, %v1902_v55 }
 0x211   : > { %2252 = vmatmul.msk.bf16.gmra.mxu3 %vm1934_vm11, %v1919_v58  ;;  %v3020_v18 = vpop.permute.xlu1 %3019 }
 0x212   : > { %v3022_v23 = vunpack.i.h.bf16 %v3020_v18  ;;  %v3021_v38 = vunpack.i.l.bf16 %v3020_v18 }
 0x213   : > { %v3030_v48 = vpop.permute.xlu0 %3029 }
 0x214   : > { %v1845_v59 = vsel %vm1838_vm10, %v4141_v29, %v3021_v38  ;;  %v1846_v42 = vsel %vm1838_vm10, %v4144_v61, %v3022_v23  ;;  %v3032_v49 = vunpack.i.h.bf16 %v3030_v48  ;;  %v3031_v53 = vunpack.i.l.bf16 %v3030_v48 }
 0x215   : > { %v1853_v29 = vsel %vm1838_vm10, %v4232_v36, %v3026_v35  ;;  %v1854_v61 = vsel %vm1838_vm10, %v4236_v17, %v3027_v40 }
 0x216   : > { %v1878_v8 = vsel %vm1871_vm9, %v1845_v59, %v3031_v53  ;;  %v1879_v33 = vsel %vm1871_vm9, %v1846_v42, %v3032_v49 }
 0x217   : > { %v1907_v7 = vpack.c.bf16 %v1879_v33, %v1878_v8 }
 0x219   : > { %2240 = vmatmul.msk.bf16.gmra.mxu0 %vm1934_vm11, %v1907_v7  ;;  %v3035_v20 = vpop.permute.xlu1 %3034 }
 0x21a   : > { %v3037_v46 = vunpack.i.h.bf16 %v3035_v20  ;;  %v3036_v62 = vunpack.i.l.bf16 %v3035_v20 }
 0x21c   : > { %v1886_v4 = vsel %vm1871_vm9, %v1853_v29, %v3036_v62  ;;  %v1887_v21 = vsel %vm1871_vm9, %v1854_v61, %v3037_v46 }
 0x21d   : > { %v1911_v50 = vpack.c.bf16 %v1887_v21, %v1886_v4 }
 0x21f   : > { %2244 = vmatmul.msk.bf16.gmra.mxu1 %vm1934_vm11, %v1911_v50 }
 0x23d   : > { %v2039_v9 = vpop.f32.mrf.mxu2 }
 0x23e   : > { %v2040_v36 = vadd.f32 %v4409_v6, %v2039_v9 }
 0x240   : > { %v2095_v17 = vpack.c.bf16 %v2040_v36, %v2040_v36 }
 0x242   : > { %2128 = vst.msk [vmem:[%s4414_s29 + $0x40] sm:$0xf] %vm2111_vm12, %v2095_v17 }
 0x244   : > { %v2059_v56 = vpop.f32.mrf.mxu3 }
 0x245   : > { %v2060_v39 = vadd.f32 %v4409_v6, %v2059_v56  ;;  %v2041_v43 = vpop.f32.mrf.mxu2 }
 0x246   : > { %v2042_v52 = vadd.f32 %v4409_v6, %v2041_v43  ;;  %v1999_v63 = vpop.f32.mrf.mxu0 }
 0x247   : > { %v2103_v41 = vpack.c.bf16 %v2060_v39, %v2060_v39  ;;  %v2000_v51 = vadd.f32 %v4409_v6, %v1999_v63 }
 0x248   : > { %v2096_v16 = vpack.c.bf16 %v2042_v52, %v2042_v52 }
 0x249   : > { %2136 = vst.msk [vmem:[%s4414_s29 + $0x60] sm:$0xf] %vm2111_vm12, %v2103_v41  ;;  %v2079_v47 = vpack.c.bf16 %v2000_v51, %v2000_v51 }
 0x24a   : > { %2129 = vst.msk [vmem:[%s4414_s29 + $0x44] sm:$0xf] %vm2111_vm12, %v2096_v16 }
 0x24b   : > { %2112 = vst.msk [vmem:[%s4414_s29] sm:$0xf] %vm2111_vm12, %v2079_v47 }
 0x24c   : > { %v2061_v5 = vpop.f32.mrf.mxu3  ;;  %v2019_v14 = vpop.f32.mrf.mxu1 }
 0x24d   : > { %v2062_v11 = vadd.f32 %v4409_v6, %v2061_v5  ;;  %v2020_v25 = vadd.f32 %v4409_v6, %v2019_v14 }
 0x24e   : > { %v2001_v57 = vpop.f32.mrf.mxu0 }
 0x24f   : > { %v2104_v27 = vpack.c.bf16 %v2062_v11, %v2062_v11  ;;  %v2087_v32 = vpack.c.bf16 %v2020_v25, %v2020_v25  ;;  %v2002_v22 = vadd.f32 %v4409_v6, %v2001_v57 }
 0x251   : > { %2137 = vst.msk [vmem:[%s4414_s29 + $0x64] sm:$0xf] %vm2111_vm12, %v2104_v27  ;;  %v2080_v54 = vpack.c.bf16 %v2002_v22, %v2002_v22 }
 0x252   : > { %2120 = vst.msk [vmem:[%s4414_s29 + $0x20] sm:$0xf] %vm2111_vm12, %v2087_v32 }
 0x253   : > { %2113 = vst.msk [vmem:[%s4414_s29 + $0x4] sm:$0xf] %vm2111_vm12, %v2080_v54 }
 0x254   : > { %v2021_v15 = vpop.f32.mrf.mxu1 }
 0x255   : > { %v2022_v10 = vadd.f32 %v4409_v6, %v2021_v15 }
 0x257   : > { %v2088_v37 = vpack.c.bf16 %v2022_v10, %v2022_v10 }
 0x259   : > { %2121 = vst.msk [vmem:[%s4414_s29 + $0x24] sm:$0xf] %vm2111_vm12, %v2088_v37 }
 0x25c   : > { %v2044_v3 = vpop.f32.mrf.mxu2 }
 0x25d   : > { %v2045_v30 = vadd.f32 %v4409_v6, %v2044_v3 }
 0x25f   : > { %v2097_v28 = vpack.c.bf16 %v2045_v30, %v2045_v30  ;;  %v2024_v31 = vpop.f32.mrf.mxu1 }
 0x260   : > { %v2025_v19 = vadd.f32 %v4409_v6, %v2024_v31 }
 0x261   : > { %2130 = vst.msk [vmem:[%s4414_s29 + $0x48] sm:$0xf] %vm2111_vm12, %v2097_v28 }
 0x262   : > { %v2089_v2 = vpack.c.bf16 %v2025_v19, %v2025_v19  ;;  %v2064_v13 = vpop.f32.mrf.mxu3 }
 0x263   : > { %v2065_v26 = vadd.f32 %v4409_v6, %v2064_v13 }
 0x264   : > { %2122 = vst.msk [vmem:[%s4414_s29 + $0x28] sm:$0xf] %vm2111_vm12, %v2089_v2  ;;  %v2046_v0 = vpop.f32.mrf.mxu2  ;;  %v2004_v34 = vpop.f32.mrf.mxu0 }
 0x265   : > { %v2105_v45 = vpack.c.bf16 %v2065_v26, %v2065_v26  ;;  %v2047_v60 = vadd.f32 %v4409_v6, %v2046_v0  ;;  %v2005_v1 = vadd.f32 %v4409_v6, %v2004_v34 }
 0x267   : > { %2138 = vst.msk [vmem:[%s4414_s29 + $0x68] sm:$0xf] %vm2111_vm12, %v2105_v45  ;;  %v2098_v12 = vpack.c.bf16 %v2047_v60, %v2047_v60  ;;  %v2081_v55 = vpack.c.bf16 %v2005_v1, %v2005_v1  ;;  %v2026_v24 = vpop.f32.mrf.mxu1 }
 0x268   : > { %v2027_v58 = vadd.f32 %v4409_v6, %v2026_v24 }
 0x269   : > { %2131 = vst.msk [vmem:[%s4414_s29 + $0x4c] sm:$0xf] %vm2111_vm12, %v2098_v12 }
 0x26a   : > { %2114 = vst.msk [vmem:[%s4414_s29 + $0x8] sm:$0xf] %vm2111_vm12, %v2081_v55  ;;  %v2090_v18 = vpack.c.bf16 %v2027_v58, %v2027_v58  ;;  %v2066_v23 = vpop.f32.mrf.mxu3 }
 0x26b   : > { %v2067_v38 = vadd.f32 %v4409_v6, %v2066_v23 }
 0x26c   : > { %2123 = vst.msk [vmem:[%s4414_s29 + $0x2c] sm:$0xf] %vm2111_vm12, %v2090_v18  ;;  %v2006_v48 = vpop.f32.mrf.mxu0 }
 0x26d   : > { %v2106_v44 = vpack.c.bf16 %v2067_v38, %v2067_v38  ;;  %v2007_v59 = vadd.f32 %v4409_v6, %v2006_v48 }
 0x26f   : > { %2139 = vst.msk [vmem:[%s4414_s29 + $0x6c] sm:$0xf] %vm2111_vm12, %v2106_v44  ;;  %v2082_v42 = vpack.c.bf16 %v2007_v59, %v2007_v59 }
 0x271   : > { %2115 = vst.msk [vmem:[%s4414_s29 + $0xc] sm:$0xf] %vm2111_vm12, %v2082_v42 }
 0x275   : > { %v2069_v49 = vpop.f32.mrf.mxu3 }
 0x276   : > { %v2070_v53 = vadd.f32 %v4409_v6, %v2069_v49 }
 0x277   : > { %v2009_v8 = vpop.f32.mrf.mxu0 }
 0x278   : > { %v2107_v33 = vpack.c.bf16 %v2070_v53, %v2070_v53  ;;  %v2010_v40 = vadd.f32 %v4409_v6, %v2009_v8 }
 0x27a   : > { %2140 = vst.msk [vmem:[%s4414_s29 + $0x70] sm:$0xf] %vm2111_vm12, %v2107_v33  ;;  %v2083_v35 = vpack.c.bf16 %v2010_v40, %v2010_v40  ;;  %v2049_v7 = vpop.f32.mrf.mxu2 }
 0x27b   : > { %v2050_v20 = vadd.f32 %v4409_v6, %v2049_v7 }
 0x27c   : > { %2116 = vst.msk [vmem:[%s4414_s29 + $0x10] sm:$0xf] %vm2111_vm12, %v2083_v35 }
 0x27d   : > { %v2099_v46 = vpack.c.bf16 %v2050_v20, %v2050_v20  ;;  %v2071_v62 = vpop.f32.mrf.mxu3 }
 0x27e   : > { %v2072_v29 = vadd.f32 %v4409_v6, %v2071_v62  ;;  %v2029_v61 = vpop.f32.mrf.mxu1 }
 0x27f   : > { %2132 = vst.msk [vmem:[%s4414_s29 + $0x50] sm:$0xf] %vm2111_vm12, %v2099_v46  ;;  %v2011_v4 = vpop.f32.mrf.mxu0  ;;  %v2030_v21 = vadd.f32 %v4409_v6, %v2029_v61 }
 0x280   : > { %v2108_v50 = vpack.c.bf16 %v2072_v29, %v2072_v29  ;;  %v2012_v9 = vadd.f32 %v4409_v6, %v2011_v4 }
 0x281   : > { %v2091_v36 = vpack.c.bf16 %v2030_v21, %v2030_v21 }
 0x282   : > { %2141 = vst.msk [vmem:[%s4414_s29 + $0x74] sm:$0xf] %vm2111_vm12, %v2108_v50  ;;  %v2084_v17 = vpack.c.bf16 %v2012_v9, %v2012_v9  ;;  %v2051_v56 = vpop.f32.mrf.mxu2 }
 0x283   : > { %2124 = vst.msk [vmem:[%s4414_s29 + $0x30] sm:$0xf] %vm2111_vm12, %v2091_v36  ;;  %v2052_v39 = vadd.f32 %v4409_v6, %v2051_v56 }
 0x284   : > { %2117 = vst.msk [vmem:[%s4414_s29 + $0x14] sm:$0xf] %vm2111_vm12, %v2084_v17 }
 0x285   : > { %v2100_v43 = vpack.c.bf16 %v2052_v39, %v2052_v39 }
 0x286   : > { %v2031_v52 = vpop.f32.mrf.mxu1 }
 0x287   : > { %2133 = vst.msk [vmem:[%s4414_s29 + $0x54] sm:$0xf] %vm2111_vm12, %v2100_v43  ;;  %v2032_v63 = vadd.f32 %v4409_v6, %v2031_v52 }
 0x289   : > { %v2092_v41 = vpack.c.bf16 %v2032_v63, %v2032_v63 }
 0x28b   : > { %2125 = vst.msk [vmem:[%s4414_s29 + $0x34] sm:$0xf] %vm2111_vm12, %v2092_v41 }
 0x28d   : > { %v2054_v51 = vpop.f32.mrf.mxu2 }
 0x28e   : > { %v2055_v16 = vadd.f32 %v4409_v6, %v2054_v51 }
 0x290   : > { %v2101_v47 = vpack.c.bf16 %v2055_v16, %v2055_v16 }
 0x292   : > { %2134 = vst.msk [vmem:[%s4414_s29 + $0x58] sm:$0xf] %vm2111_vm12, %v2101_v47 }
 0x294   : > { %v2074_v5 = vpop.f32.mrf.mxu3 }
 0x295   : > { %v2075_v14 = vadd.f32 %v4409_v6, %v2074_v5  ;;  %v2056_v11 = vpop.f32.mrf.mxu2 }
 0x296   : > { %v2057_v25 = vadd.f32 %v4409_v6, %v2056_v11  ;;  %v2014_v57 = vpop.f32.mrf.mxu0 }
 0x297   : > { %v2109_v27 = vpack.c.bf16 %v2075_v14, %v2075_v14  ;;  %v2015_v32 = vadd.f32 %v4409_v6, %v2014_v57 }
 0x298   : > { %v2102_v22 = vpack.c.bf16 %v2057_v25, %v2057_v25 }
 0x299   : > { %2142 = vst.msk [vmem:[%s4414_s29 + $0x78] sm:$0xf] %vm2111_vm12, %v2109_v27  ;;  %v2085_v54 = vpack.c.bf16 %v2015_v32, %v2015_v32 }
 0x29a   : > { %2135 = vst.msk [vmem:[%s4414_s29 + $0x5c] sm:$0xf] %vm2111_vm12, %v2102_v22 }
 0x29b   : > { %2118 = vst.msk [vmem:[%s4414_s29 + $0x18] sm:$0xf] %vm2111_vm12, %v2085_v54 }
 0x29c   : > { %v2076_v15 = vpop.f32.mrf.mxu3  ;;  %v2034_v10 = vpop.f32.mrf.mxu1 }
 0x29d   : > { %v2077_v37 = vadd.f32 %v4409_v6, %v2076_v15  ;;  %v2035_v3 = vadd.f32 %v4409_v6, %v2034_v10 }
 0x29e   : > { %v2016_v30 = vpop.f32.mrf.mxu0 }
 0x29f   : > { %v2110_v28 = vpack.c.bf16 %v2077_v37, %v2077_v37  ;;  %v2093_v31 = vpack.c.bf16 %v2035_v3, %v2035_v3  ;;  %v2017_v19 = vadd.f32 %v4409_v6, %v2016_v30 }
 0x2a1   : > { %2143 = vst.msk [vmem:[%s4414_s29 + $0x7c] sm:$0xf] %vm2111_vm12, %v2110_v28  ;;  %v2086_v2 = vpack.c.bf16 %v2017_v19, %v2017_v19 }
 0x2a2   : > { %2126 = vst.msk [vmem:[%s4414_s29 + $0x38] sm:$0xf] %vm2111_vm12, %v2093_v31 }
 0x2a3   : > { %2119 = vst.msk [vmem:[%s4414_s29 + $0x1c] sm:$0xf] %vm2111_vm12, %v2086_v2 }
 0x2a4   : > { %v2036_v13 = vpop.f32.mrf.mxu1 }
 0x2a5   : > { %v2037_v26 = vadd.f32 %v4409_v6, %v2036_v13 }
 0x2a7   : > { %v2094_v0 = vpack.c.bf16 %v2037_v26, %v2037_v26 }
 0x2a9   : > { %2127 = vst.msk [vmem:[%s4414_s29 + $0x3c] sm:$0xf] %vm2111_vm12, %v2094_v0 }
 0x2aa   : > { %3066 = shalt.err (!%p3063_p3)
}
 0x2ab   : > { %s3113_s25 = smov 64   ;;  %s3114_s26 = smov 4  }
 0x2ac   : > { %2347 = dma.vmem_to_hbm [thread:$0]  (%p3173_p5), %s2158_s16, 2048, %s2160_s7, %s2145_s8, %s3113_s25, %s3113_s25, %s3114_s26  }
 0x2ad PF: > { %p2353_p4 = scmp.ge.s32.totalorder %s3101_s15, 2  ;;  %s2174_s27 = sand.u32 1, %s3089_s12  }
 0x2ae   : > { %s2175_s28 = scalar_lea.sflag [#allocation4], %s2174_s27 }
 0x2af   : > { %p2350_p7 = pnand %p2353_p4, %p3177_p6 }
 0x2b1   : > { %p2351_p8 = pneg %p2350_p7 }
 0x2b3   : > { %3084 = dma.done.wait (%p2351_p8), %s2175_s28, 2048  }
 0x2b4   : > { %3086 = vsyncadd (%p2351_p8), %s2175_s28, 4294965248  ;;  %p13_p9 = scmp.ge.s32.totalorder %s3160_s18, 4   ;;  %s4611_s12 = smov %s3093_s13 }
 0x2b5   : > { %s4612_s13 = smov %s3097_s14  ;;  %s4613_s14 = smov %s3171_s21 }
 0x2b6   : > { %s4614_s15 = smov %s3160_s18  ;;  %15 = sbr.rel (!%p13_p9) target bundleno = 3 (0x3), region = 69 }
 0x2bb   :  { %2181 = vsyncpa [#allocation4], 1 }
 0x2bc   :  { %2183 = vsyncpa [#allocation4 + $0x1], 1 }

</bundles_post_ra>
